<compile_context>
chip_gen: v6e
topology: v6e:2x2x1
jax: 0.10.0
libtpu: 0.0.40
codegen_flags: <defaults>
</compile_context>

<pallas_src>
import jax
import jax.numpy as jnp
from jax.experimental import pallas as pl
from jax.experimental.pallas import tpu as pltpu


# ---------------------------------------------------------------------------
# Fused Pallas kernel (one grid step == one image)
# ---------------------------------------------------------------------------

def _net_kernel(p_ref, w1_ref, b1_ref, w2_ref, b2_ref, wfc_ref, bfc_ref, o_ref):
    """Fully-fused forward for one image.

    p_ref   : (1, 1024, 27) bf16  pool-split im2col patches for conv1.
              row = pool*256 + r4*64 + c4*16 + a*4 + b, where the pooled conv1
              output pixel is (h, w) = (4a + r4, 4b + c4) and pool = pi*2 + pj
              indexes the 2x2 max-pool window position; col = (di*3 + dj)*3 + cin.
    w1_ref  : (27, 10)   bf16  conv1 weight, rows ordered (di, dj, cin).
    b1_ref  : (1, 10)    f32
    w2_ref  : (9, 10, 20) f32  conv2 weight, [di*3 + dj, cin, cout].
    b2_ref  : (1, 20)    f32
    wfc_ref : (16, 20)   f32   fc1 weight pre-permuted to [(ph*4 + pw), cout].
    bfc_ref : (1, 1)     f32
    o_ref   : (1, 1, 1)  f32   sigmoid output.
    """
    # ---- conv1 (3->10, k=3) + maxpool(2) + relu : one stacked MXU matmul ----
    pp = p_ref[0]                                                    # (1024, 27)
    c_all = jnp.dot(pp, w1_ref[...], preferred_element_type=jnp.float32)
    pooled1 = jnp.maximum(jnp.maximum(c_all[0:256], c_all[256:512]),
                          jnp.maximum(c_all[512:768], c_all[768:1024]))
    y1 = jnp.maximum(pooled1 + b1_ref[...], 0.0)                     # (256, 10)
    # y1 row = r4*64 + c4*16 + a*4 + b   <->   spatial pixel (4a + r4, 4b + c4)

    row_id = jax.lax.broadcasted_iota(jnp.int32, (16, 10), 0)

    def tap_block(r, s):
        # (16, 10) matrix whose row (ph*4 + pw) holds y1[4ph + r, 4pw + s, :],
        # zero where (4ph + r, 4pw + s) falls into conv2's zero padding.
        # r, s are static ints in {-1, .., 3}.
        rr = r if r >= 0 else 3
        ss = s if s >= 0 else 3
        shift = (4 if r < 0 else 0) + (1 if s < 0 else 0)
        start = rr * 64 + ss * 16 - shift
        m = y1[start:start + 16, :]
        if shift:
            m = jnp.where(row_id >= shift, m, jnp.zeros_like(m))
        if s < 0:
            m = jnp.where((row_id & 3) != 0, m, jnp.zeros_like(m))
        return m

    # ---- conv2 (10->20, k=3, stride=2, pad=1) + maxpool(2) + relu ----
    # All im2col gathering is done in-register from the resident y1.
    blocks = {}
    pooled2 = None
    for qi in range(2):                 # 2x2 max-pool window position (qi, qj)
        for qj in range(2):
            acc = jnp.zeros((16, 20), jnp.float32)
            for di in range(3):
                for dj in range(3):
                    r = 2 * qi + di - 1
                    s = 2 * qj + dj - 1
                    if (r, s) not in blocks:
                        blocks[(r, s)] = tap_block(r, s)
                    acc = acc + jnp.dot(blocks[(r, s)], w2_ref[di * 3 + dj],
                                        preferred_element_type=jnp.float32)
            pooled2 = acc if pooled2 is None else jnp.maximum(pooled2, acc)
    y2 = jnp.maximum(pooled2 + b2_ref[...], 0.0)                     # (16, 20)

    # ---- flatten + Dropout (identity at inference) + fc1(320->1) + sigmoid ----
    z = jnp.sum(y2 * wfc_ref[...], axis=0, keepdims=True)            # (1, 20)
    z = jnp.sum(z, axis=1, keepdims=True) + bfc_ref[...]             # (1, 1)
    o_ref[0] = (1.0 / (1.0 + jnp.exp(-z))).astype(o_ref.dtype)


# ---------------------------------------------------------------------------
# JAX-side prep (cheap, fuses into one XLA gather/copy) + wrapper
# ---------------------------------------------------------------------------

def _conv1_patches(x_nchw):
    """NCHW image -> pool-split, mod-4-grouped im2col patches (B, 1024, 27)."""
    B = x_nchw.shape[0]
    x = jnp.transpose(x_nchw, (0, 2, 3, 1))                          # (B, 34, 34, 3)
    taps = [x[:, di:di + 32, dj:dj + 32, :]
            for di in range(3) for dj in range(3)]
    cols = jnp.stack(taps, axis=3)                                   # (B, 32, 32, 9, 3)
    # conv1 output row I = 8a + 2*r4 + pi ; col J = 8b + 2*c4 + pj
    cols = cols.reshape(B, 4, 4, 2, 4, 4, 2, 9, 3)                   # (B,a,r4,pi,b,c4,pj,9,3)
    cols = jnp.transpose(cols, (0, 3, 6, 2, 5, 1, 4, 7, 8))          # (B,pi,pj,r4,c4,a,b,9,3)
    return cols.reshape(B, 1024, 27)


def init_params(key):
    """Parameters with the same shapes/layout as the PyTorch module."""
    k = jax.random.split(key, 6)
    return {
        "w1": jax.random.normal(k[0], (10, 3, 3, 3), jnp.float32) * 0.1,   # OIHW
        "b1": jax.random.normal(k[1], (10,), jnp.float32) * 0.1,
        "w2": jax.random.normal(k[2], (20, 10, 3, 3), jnp.float32) * 0.1,  # OIHW
        "b2": jax.random.normal(k[3], (20,), jnp.float32) * 0.1,
        "wfc": jax.random.normal(k[4], (1, 320), jnp.float32) * 0.1,       # fc1.weight
        "bfc": jax.random.normal(k[5], (1,), jnp.float32) * 0.1,           # fc1.bias
    }


def prepare_params(params):
    """One-time re-layout of the torch-shaped weights into kernel layouts."""
    w1m = jnp.transpose(params["w1"], (2, 3, 1, 0)).reshape(27, 10)        # (di,dj,cin) x cout
    w2t = jnp.transpose(params["w2"], (2, 3, 1, 0)).reshape(9, 10, 20)     # [tap, cin, cout]
    # torch x.view(B,-1) flatten order is (cout, ph, pw): feature = f*16 + ph*4 + pw.
    wfck = jnp.transpose(params["wfc"].reshape(20, 16))                    # (16, 20)
    return {
        "w1": w1m.astype(jnp.bfloat16),
        "b1": params["b1"].reshape(1, 10).astype(jnp.float32),
        "w2": w2t.astype(jnp.float32),
        "b2": params["b2"].reshape(1, 20).astype(jnp.float32),
        "wfc": wfck.astype(jnp.float32),
        "bfc": params["bfc"].reshape(1, 1).astype(jnp.float32),
    }


def net_forward(x_nchw, kparams):
    B = x_nchw.shape[0]
    patches = _conv1_patches(x_nchw).astype(jnp.bfloat16)                  # (B, 1024, 27)
    out = pl.pallas_call(
        _net_kernel,
        out_shape=jax.ShapeDtypeStruct((B, 1, 1), jnp.float32),
        grid=(B,),
        in_specs=[
            pl.BlockSpec((1, 1024, 27), lambda b: (b, 0, 0)),
            pl.BlockSpec((27, 10), lambda b: (0, 0)),
            pl.BlockSpec((1, 10), lambda b: (0, 0)),
            pl.BlockSpec((9, 10, 20), lambda b: (0, 0, 0)),
            pl.BlockSpec((1, 20), lambda b: (0, 0)),
            pl.BlockSpec((16, 20), lambda b: (0, 0)),
            pl.BlockSpec((1, 1), lambda b: (0, 0)),
        ],
        out_specs=pl.BlockSpec((1, 1, 1), lambda b: (b, 0, 0)),
        compiler_params=pltpu.CompilerParams(
            dimension_semantics=("parallel",)),
    )(patches, kparams["w1"], kparams["b1"], kparams["w2"], kparams["b2"],
      kparams["wfc"], kparams["bfc"])
    return out[:, 0, :]                                                    # (B, 1)


# ---------------------------------------------------------------------------
# Pure-JAX reference (mirrors the PyTorch forward exactly, all f32)
# ---------------------------------------------------------------------------

def net_forward_ref(x_nchw, params):
    dn = ("NCHW", "OIHW", "NCHW")
    y = jax.lax.conv_general_dilated(x_nchw, params["w1"], (1, 1), "VALID",
                                     dimension_numbers=dn)
    y = y + params["b1"].reshape(1, -1, 1, 1)
    y = jax.lax.reduce_window(y, -jnp.inf, jax.lax.max,
                              (1, 1, 2, 2), (1, 1, 2, 2), "VALID")
    y = jnp.maximum(y, 0.0)
    y = jax.lax.conv_general_dilated(y, params["w2"], (2, 2),
                                     ((1, 1), (1, 1)), dimension_numbers=dn)
    y = y + params["b2"].reshape(1, -1, 1, 1)
    y = jax.lax.reduce_window(y, -jnp.inf, jax.lax.max,
                              (1, 1, 2, 2), (1, 1, 2, 2), "VALID")
    y = jnp.maximum(y, 0.0)
    feat = y.reshape(x_nchw.shape[0], -1)                 # torch .view(batch, -1)
    z = feat @ params["wfc"].T + params["bfc"]
    return jax.nn.sigmoid(z)


# ---------------------------------------------------------------------------

if __name__ == "__main__":
    key = jax.random.PRNGKey(0)
    k_x, k_p = jax.random.split(key)
    # 34x34 input -> conv1 -> 32 -> pool -> 16 -> conv2(s2,p1) -> 8 -> pool -> 4,
    # giving the 20*4*4 = 320 features fc1 expects.
    x = jax.random.normal(k_x, (2, 3, 34, 34), jnp.float32)
    params = init_params(k_p)
    kparams = prepare_params(params)

    out = jax.block_until_ready(jax.jit(net_forward)(x, kparams))
    ref = jax.block_until_ready(net_forward_ref(x, params))

    assert out.shape == (2, 1)
    assert bool(jnp.all(jnp.isfinite(out)))
    assert bool(jnp.all((out >= 0.0) & (out <= 1.0)))
    # bf16 is only used for the conv1 patch/weight MXU inputs -> tiny deltas.
    assert bool(jnp.allclose(out, ref, atol=2e-2)), (out, ref)
    print("KERNEL_OK")
</pallas_src>

<mosaic_0001>
module attributes {stable_mosaic.version = 11 : i64} {
  func.func @_net_kernel(%arg0: i32, %arg1: memref<1x1024x27xbf16, #tpu.memory_space<vmem>>, %arg2: memref<27x10xbf16, #tpu.memory_space<vmem>>, %arg3: memref<1x10xf32, #tpu.memory_space<vmem>>, %arg4: memref<9x10x20xf32, #tpu.memory_space<vmem>>, %arg5: memref<1x20xf32, #tpu.memory_space<vmem>>, %arg6: memref<16x20xf32, #tpu.memory_space<vmem>>, %arg7: memref<1x1xf32, #tpu.memory_space<vmem>>, %arg8: memref<1x1x1xf32, #tpu.memory_space<vmem>>) attributes {dimension_semantics = [#tpu.dimension_semantics<parallel>], iteration_bounds = array<i64: 2>, scalar_prefetch = 0 : i64, scratch_operands = 0 : i64, tpu.core_type = #tpu.core_type<tc>, window_params = [{transform_indices = @transform_0, window_bounds = array<i64: 1, 1024, 27>}, {pipeline_mode = #tpu.pipeline_mode<synchronous>, transform_indices = @transform_1, window_bounds = array<i64: 27, 10>}, {pipeline_mode = #tpu.pipeline_mode<synchronous>, transform_indices = @transform_2, window_bounds = array<i64: 1, 10>}, {pipeline_mode = #tpu.pipeline_mode<synchronous>, transform_indices = @transform_3, window_bounds = array<i64: 9, 10, 20>}, {pipeline_mode = #tpu.pipeline_mode<synchronous>, transform_indices = @transform_4, window_bounds = array<i64: 1, 20>}, {pipeline_mode = #tpu.pipeline_mode<synchronous>, transform_indices = @transform_5, window_bounds = array<i64: 16, 20>}, {pipeline_mode = #tpu.pipeline_mode<synchronous>, transform_indices = @transform_6, window_bounds = array<i64: 1, 1>}, {transform_indices = @transform_7, window_bounds = array<i64: 1, 1, 1>}]} {
    %c0 = arith.constant 0 : index
    %c0_0 = arith.constant 0 : index
    %c0_1 = arith.constant 0 : index
    %0 = vector.load %arg1[%c0, %c0_0, %c0_1] : memref<1x1024x27xbf16, #tpu.memory_space<vmem>>, vector<1x1024x27xbf16>
    %1 = vector.shape_cast %0 : vector<1x1024x27xbf16> to vector<1024x27xbf16>
    %c0_2 = arith.constant 0 : index
    %c0_3 = arith.constant 0 : index
    %2 = vector.load %arg2[%c0_2, %c0_3] : memref<27x10xbf16, #tpu.memory_space<vmem>>, vector<27x10xbf16>
    %cst = arith.constant dense<0.000000e+00> : vector<1024x10xf32>
    %3 = tpu.matmul %1, %2, %cst {dimension_numbers = #tpu.dot_dimension_numbers<[1], [0], [0], [1], [0, 0, 1, 1], [], []>} : vector<1024x27xbf16>, vector<27x10xbf16>, vector<1024x10xf32> -> vector<1024x10xf32>
    %4 = vector.extract_strided_slice %3 {offsets = [0, 0], sizes = [256, 10], strides = [1, 1]} : vector<1024x10xf32> to vector<256x10xf32>
    %5 = vector.extract_strided_slice %3 {offsets = [256, 0], sizes = [256, 10], strides = [1, 1]} : vector<1024x10xf32> to vector<256x10xf32>
    %6 = arith.maximumf %4, %5 : vector<256x10xf32>
    %7 = vector.extract_strided_slice %3 {offsets = [512, 0], sizes = [256, 10], strides = [1, 1]} : vector<1024x10xf32> to vector<256x10xf32>
    %8 = vector.extract_strided_slice %3 {offsets = [768, 0], sizes = [256, 10], strides = [1, 1]} : vector<1024x10xf32> to vector<256x10xf32>
    %9 = arith.maximumf %7, %8 : vector<256x10xf32>
    %10 = arith.maximumf %6, %9 : vector<256x10xf32>
    %c0_4 = arith.constant 0 : index
    %c0_5 = arith.constant 0 : index
    %11 = vector.load %arg3[%c0_4, %c0_5] : memref<1x10xf32, #tpu.memory_space<vmem>>, vector<1x10xf32>
    %12 = vector.broadcast %11 : vector<1x10xf32> to vector<256x10xf32>
    %13 = arith.addf %10, %12 : vector<256x10xf32>
    %cst_6 = arith.constant 0.000000e+00 : f32
    %14 = vector.broadcast %cst_6 : f32 to vector<256x10xf32>
    %15 = arith.maximumf %13, %14 : vector<256x10xf32>
    %16 = tpu.iota {dimensions = array<i32: 0>} : vector<16x10xi32>
    %cst_7 = arith.constant 0.000000e+00 : f32
    %17 = vector.broadcast %cst_7 : f32 to vector<16x20xf32>
    %18 = vector.extract_strided_slice %15 {offsets = [235, 0], sizes = [16, 10], strides = [1, 1]} : vector<256x10xf32> to vector<16x10xf32>
    %c5_i32 = arith.constant 5 : i32
    %19 = vector.broadcast %c5_i32 : i32 to vector<16x10xi32>
    %20 = arith.cmpi sge, %16, %19 : vector<16x10xi32>
    %cst_8 = arith.constant 0.000000e+00 : f32
    %21 = vector.broadcast %cst_8 : f32 to vector<16x10xf32>
    %22 = arith.select %20, %18, %21 : vector<16x10xi1>, vector<16x10xf32>
    %c3_i32 = arith.constant 3 : i32
    %23 = vector.broadcast %c3_i32 : i32 to vector<16x10xi32>
    %24 = arith.andi %16, %23 : vector<16x10xi32>
    %c0_i32 = arith.constant 0 : i32
    %25 = vector.broadcast %c0_i32 : i32 to vector<16x10xi32>
    %26 = arith.cmpi ne, %24, %25 : vector<16x10xi32>
    %cst_9 = arith.constant 0.000000e+00 : f32
    %27 = vector.broadcast %cst_9 : f32 to vector<16x10xf32>
    %28 = arith.select %26, %22, %27 : vector<16x10xi1>, vector<16x10xf32>
    %c0_10 = arith.constant 0 : index
    %c0_11 = arith.constant 0 : index
    %c0_12 = arith.constant 0 : index
    %29 = vector.load %arg4[%c0_10, %c0_11, %c0_12] : memref<9x10x20xf32, #tpu.memory_space<vmem>>, vector<1x10x20xf32>
    %30 = vector.shape_cast %29 : vector<1x10x20xf32> to vector<10x20xf32>
    %cst_13 = arith.constant dense<0.000000e+00> : vector<16x20xf32>
    %31 = tpu.matmul %28, %30, %cst_13 {dimension_numbers = #tpu.dot_dimension_numbers<[1], [0], [0], [1], [0, 0, 1, 1], [], []>} : vector<16x10xf32>, vector<10x20xf32>, vector<16x20xf32> -> vector<16x20xf32>
    %32 = arith.addf %17, %31 : vector<16x20xf32>
    %33 = vector.extract_strided_slice %15 {offsets = [188, 0], sizes = [16, 10], strides = [1, 1]} : vector<256x10xf32> to vector<16x10xf32>
    %c4_i32 = arith.constant 4 : i32
    %34 = vector.broadcast %c4_i32 : i32 to vector<16x10xi32>
    %35 = arith.cmpi sge, %16, %34 : vector<16x10xi32>
    %cst_14 = arith.constant 0.000000e+00 : f32
    %36 = vector.broadcast %cst_14 : f32 to vector<16x10xf32>
    %37 = arith.select %35, %33, %36 : vector<16x10xi1>, vector<16x10xf32>
    %c1 = arith.constant 1 : index
    %c0_15 = arith.constant 0 : index
    %c0_16 = arith.constant 0 : index
    %38 = vector.load %arg4[%c1, %c0_15, %c0_16] : memref<9x10x20xf32, #tpu.memory_space<vmem>>, vector<1x10x20xf32>
    %39 = vector.shape_cast %38 : vector<1x10x20xf32> to vector<10x20xf32>
    %cst_17 = arith.constant dense<0.000000e+00> : vector<16x20xf32>
    %40 = tpu.matmul %37, %39, %cst_17 {dimension_numbers = #tpu.dot_dimension_numbers<[1], [0], [0], [1], [0, 0, 1, 1], [], []>} : vector<16x10xf32>, vector<10x20xf32>, vector<16x20xf32> -> vector<16x20xf32>
    %41 = arith.addf %32, %40 : vector<16x20xf32>
    %42 = vector.extract_strided_slice %15 {offsets = [204, 0], sizes = [16, 10], strides = [1, 1]} : vector<256x10xf32> to vector<16x10xf32>
    %c4_i32_18 = arith.constant 4 : i32
    %43 = vector.broadcast %c4_i32_18 : i32 to vector<16x10xi32>
    %44 = arith.cmpi sge, %16, %43 : vector<16x10xi32>
    %cst_19 = arith.constant 0.000000e+00 : f32
    %45 = vector.broadcast %cst_19 : f32 to vector<16x10xf32>
    %46 = arith.select %44, %42, %45 : vector<16x10xi1>, vector<16x10xf32>
    %c2 = arith.constant 2 : index
    %c0_20 = arith.constant 0 : index
    %c0_21 = arith.constant 0 : index
    %47 = vector.load %arg4[%c2, %c0_20, %c0_21] : memref<9x10x20xf32, #tpu.memory_space<vmem>>, vector<1x10x20xf32>
    %48 = vector.shape_cast %47 : vector<1x10x20xf32> to vector<10x20xf32>
    %cst_22 = arith.constant dense<0.000000e+00> : vector<16x20xf32>
    %49 = tpu.matmul %46, %48, %cst_22 {dimension_numbers = #tpu.dot_dimension_numbers<[1], [0], [0], [1], [0, 0, 1, 1], [], []>} : vector<16x10xf32>, vector<10x20xf32>, vector<16x20xf32> -> vector<16x20xf32>
    %50 = arith.addf %41, %49 : vector<16x20xf32>
    %51 = vector.extract_strided_slice %15 {offsets = [47, 0], sizes = [16, 10], strides = [1, 1]} : vector<256x10xf32> to vector<16x10xf32>
    %c1_i32 = arith.constant 1 : i32
    %52 = vector.broadcast %c1_i32 : i32 to vector<16x10xi32>
    %53 = arith.cmpi sge, %16, %52 : vector<16x10xi32>
    %cst_23 = arith.constant 0.000000e+00 : f32
    %54 = vector.broadcast %cst_23 : f32 to vector<16x10xf32>
    %55 = arith.select %53, %51, %54 : vector<16x10xi1>, vector<16x10xf32>
    %c3_i32_24 = arith.constant 3 : i32
    %56 = vector.broadcast %c3_i32_24 : i32 to vector<16x10xi32>
    %57 = arith.andi %16, %56 : vector<16x10xi32>
    %c0_i32_25 = arith.constant 0 : i32
    %58 = vector.broadcast %c0_i32_25 : i32 to vector<16x10xi32>
    %59 = arith.cmpi ne, %57, %58 : vector<16x10xi32>
    %cst_26 = arith.constant 0.000000e+00 : f32
    %60 = vector.broadcast %cst_26 : f32 to vector<16x10xf32>
    %61 = arith.select %59, %55, %60 : vector<16x10xi1>, vector<16x10xf32>
    %c3 = arith.constant 3 : index
    %c0_27 = arith.constant 0 : index
    %c0_28 = arith.constant 0 : index
    %62 = vector.load %arg4[%c3, %c0_27, %c0_28] : memref<9x10x20xf32, #tpu.memory_space<vmem>>, vector<1x10x20xf32>
    %63 = vector.shape_cast %62 : vector<1x10x20xf32> to vector<10x20xf32>
    %cst_29 = arith.constant dense<0.000000e+00> : vector<16x20xf32>
    %64 = tpu.matmul %61, %63, %cst_29 {dimension_numbers = #tpu.dot_dimension_numbers<[1], [0], [0], [1], [0, 0, 1, 1], [], []>} : vector<16x10xf32>, vector<10x20xf32>, vector<16x20xf32> -> vector<16x20xf32>
    %65 = arith.addf %50, %64 : vector<16x20xf32>
    %66 = vector.extract_strided_slice %15 {offsets = [0, 0], sizes = [16, 10], strides = [1, 1]} : vector<256x10xf32> to vector<16x10xf32>
    %c4 = arith.constant 4 : index
    %c0_30 = arith.constant 0 : index
    %c0_31 = arith.constant 0 : index
    %67 = vector.load %arg4[%c4, %c0_30, %c0_31] : memref<9x10x20xf32, #tpu.memory_space<vmem>>, vector<1x10x20xf32>
    %68 = vector.shape_cast %67 : vector<1x10x20xf32> to vector<10x20xf32>
    %cst_32 = arith.constant dense<0.000000e+00> : vector<16x20xf32>
    %69 = tpu.matmul %66, %68, %cst_32 {dimension_numbers = #tpu.dot_dimension_numbers<[1], [0], [0], [1], [0, 0, 1, 1], [], []>} : vector<16x10xf32>, vector<10x20xf32>, vector<16x20xf32> -> vector<16x20xf32>
    %70 = arith.addf %65, %69 : vector<16x20xf32>
    %71 = vector.extract_strided_slice %15 {offsets = [16, 0], sizes = [16, 10], strides = [1, 1]} : vector<256x10xf32> to vector<16x10xf32>
    %c5 = arith.constant 5 : index
    %c0_33 = arith.constant 0 : index
    %c0_34 = arith.constant 0 : index
    %72 = vector.load %arg4[%c5, %c0_33, %c0_34] : memref<9x10x20xf32, #tpu.memory_space<vmem>>, vector<1x10x20xf32>
    %73 = vector.shape_cast %72 : vector<1x10x20xf32> to vector<10x20xf32>
    %cst_35 = arith.constant dense<0.000000e+00> : vector<16x20xf32>
    %74 = tpu.matmul %71, %73, %cst_35 {dimension_numbers = #tpu.dot_dimension_numbers<[1], [0], [0], [1], [0, 0, 1, 1], [], []>} : vector<16x10xf32>, vector<10x20xf32>, vector<16x20xf32> -> vector<16x20xf32>
    %75 = arith.addf %70, %74 : vector<16x20xf32>
    %76 = vector.extract_strided_slice %15 {offsets = [111, 0], sizes = [16, 10], strides = [1, 1]} : vector<256x10xf32> to vector<16x10xf32>
    %c1_i32_36 = arith.constant 1 : i32
    %77 = vector.broadcast %c1_i32_36 : i32 to vector<16x10xi32>
    %78 = arith.cmpi sge, %16, %77 : vector<16x10xi32>
    %cst_37 = arith.constant 0.000000e+00 : f32
    %79 = vector.broadcast %cst_37 : f32 to vector<16x10xf32>
    %80 = arith.select %78, %76, %79 : vector<16x10xi1>, vector<16x10xf32>
    %c3_i32_38 = arith.constant 3 : i32
    %81 = vector.broadcast %c3_i32_38 : i32 to vector<16x10xi32>
    %82 = arith.andi %16, %81 : vector<16x10xi32>
    %c0_i32_39 = arith.constant 0 : i32
    %83 = vector.broadcast %c0_i32_39 : i32 to vector<16x10xi32>
    %84 = arith.cmpi ne, %82, %83 : vector<16x10xi32>
    %cst_40 = arith.constant 0.000000e+00 : f32
    %85 = vector.broadcast %cst_40 : f32 to vector<16x10xf32>
    %86 = arith.select %84, %80, %85 : vector<16x10xi1>, vector<16x10xf32>
    %c6 = arith.constant 6 : index
    %c0_41 = arith.constant 0 : index
    %c0_42 = arith.constant 0 : index
    %87 = vector.load %arg4[%c6, %c0_41, %c0_42] : memref<9x10x20xf32, #tpu.memory_space<vmem>>, vector<1x10x20xf32>
    %88 = vector.shape_cast %87 : vector<1x10x20xf32> to vector<10x20xf32>
    %cst_43 = arith.constant dense<0.000000e+00> : vector<16x20xf32>
    %89 = tpu.matmul %86, %88, %cst_43 {dimension_numbers = #tpu.dot_dimension_numbers<[1], [0], [0], [1], [0, 0, 1, 1], [], []>} : vector<16x10xf32>, vector<10x20xf32>, vector<16x20xf32> -> vector<16x20xf32>
    %90 = arith.addf %75, %89 : vector<16x20xf32>
    %91 = vector.extract_strided_slice %15 {offsets = [64, 0], sizes = [16, 10], strides = [1, 1]} : vector<256x10xf32> to vector<16x10xf32>
    %c7 = arith.constant 7 : index
    %c0_44 = arith.constant 0 : index
    %c0_45 = arith.constant 0 : index
    %92 = vector.load %arg4[%c7, %c0_44, %c0_45] : memref<9x10x20xf32, #tpu.memory_space<vmem>>, vector<1x10x20xf32>
    %93 = vector.shape_cast %92 : vector<1x10x20xf32> to vector<10x20xf32>
    %cst_46 = arith.constant dense<0.000000e+00> : vector<16x20xf32>
    %94 = tpu.matmul %91, %93, %cst_46 {dimension_numbers = #tpu.dot_dimension_numbers<[1], [0], [0], [1], [0, 0, 1, 1], [], []>} : vector<16x10xf32>, vector<10x20xf32>, vector<16x20xf32> -> vector<16x20xf32>
    %95 = arith.addf %90, %94 : vector<16x20xf32>
    %96 = vector.extract_strided_slice %15 {offsets = [80, 0], sizes = [16, 10], strides = [1, 1]} : vector<256x10xf32> to vector<16x10xf32>
    %c8 = arith.constant 8 : index
    %c0_47 = arith.constant 0 : index
    %c0_48 = arith.constant 0 : index
    %97 = vector.load %arg4[%c8, %c0_47, %c0_48] : memref<9x10x20xf32, #tpu.memory_space<vmem>>, vector<1x10x20xf32>
    %98 = vector.shape_cast %97 : vector<1x10x20xf32> to vector<10x20xf32>
    %cst_49 = arith.constant dense<0.000000e+00> : vector<16x20xf32>
    %99 = tpu.matmul %96, %98, %cst_49 {dimension_numbers = #tpu.dot_dimension_numbers<[1], [0], [0], [1], [0, 0, 1, 1], [], []>} : vector<16x10xf32>, vector<10x20xf32>, vector<16x20xf32> -> vector<16x20xf32>
    %100 = arith.addf %95, %99 : vector<16x20xf32>
    %cst_50 = arith.constant 0.000000e+00 : f32
    %101 = vector.broadcast %cst_50 : f32 to vector<16x20xf32>
    %c0_51 = arith.constant 0 : index
    %c0_52 = arith.constant 0 : index
    %c0_53 = arith.constant 0 : index
    %102 = vector.load %arg4[%c0_51, %c0_52, %c0_53] : memref<9x10x20xf32, #tpu.memory_space<vmem>>, vector<1x10x20xf32>
    %103 = vector.shape_cast %102 : vector<1x10x20xf32> to vector<10x20xf32>
    %cst_54 = arith.constant dense<0.000000e+00> : vector<16x20xf32>
    %104 = tpu.matmul %46, %103, %cst_54 {dimension_numbers = #tpu.dot_dimension_numbers<[1], [0], [0], [1], [0, 0, 1, 1], [], []>} : vector<16x10xf32>, vector<10x20xf32>, vector<16x20xf32> -> vector<16x20xf32>
    %105 = arith.addf %101, %104 : vector<16x20xf32>
    %106 = vector.extract_strided_slice %15 {offsets = [220, 0], sizes = [16, 10], strides = [1, 1]} : vector<256x10xf32> to vector<16x10xf32>
    %c4_i32_55 = arith.constant 4 : i32
    %107 = vector.broadcast %c4_i32_55 : i32 to vector<16x10xi32>
    %108 = arith.cmpi sge, %16, %107 : vector<16x10xi32>
    %cst_56 = arith.constant 0.000000e+00 : f32
    %109 = vector.broadcast %cst_56 : f32 to vector<16x10xf32>
    %110 = arith.select %108, %106, %109 : vector<16x10xi1>, vector<16x10xf32>
    %c1_57 = arith.constant 1 : index
    %c0_58 = arith.constant 0 : index
    %c0_59 = arith.constant 0 : index
    %111 = vector.load %arg4[%c1_57, %c0_58, %c0_59] : memref<9x10x20xf32, #tpu.memory_space<vmem>>, vector<1x10x20xf32>
    %112 = vector.shape_cast %111 : vector<1x10x20xf32> to vector<10x20xf32>
    %cst_60 = arith.constant dense<0.000000e+00> : vector<16x20xf32>
    %113 = tpu.matmul %110, %112, %cst_60 {dimension_numbers = #tpu.dot_dimension_numbers<[1], [0], [0], [1], [0, 0, 1, 1], [], []>} : vector<16x10xf32>, vector<10x20xf32>, vector<16x20xf32> -> vector<16x20xf32>
    %114 = arith.addf %105, %113 : vector<16x20xf32>
    %115 = vector.extract_strided_slice %15 {offsets = [236, 0], sizes = [16, 10], strides = [1, 1]} : vector<256x10xf32> to vector<16x10xf32>
    %c4_i32_61 = arith.constant 4 : i32
    %116 = vector.broadcast %c4_i32_61 : i32 to vector<16x10xi32>
    %117 = arith.cmpi sge, %16, %116 : vector<16x10xi32>
    %cst_62 = arith.constant 0.000000e+00 : f32
    %118 = vector.broadcast %cst_62 : f32 to vector<16x10xf32>
    %119 = arith.select %117, %115, %118 : vector<16x10xi1>, vector<16x10xf32>
    %c2_63 = arith.constant 2 : index
    %c0_64 = arith.constant 0 : index
    %c0_65 = arith.constant 0 : index
    %120 = vector.load %arg4[%c2_63, %c0_64, %c0_65] : memref<9x10x20xf32, #tpu.memory_space<vmem>>, vector<1x10x20xf32>
    %121 = vector.shape_cast %120 : vector<1x10x20xf32> to vector<10x20xf32>
    %cst_66 = arith.constant dense<0.000000e+00> : vector<16x20xf32>
    %122 = tpu.matmul %119, %121, %cst_66 {dimension_numbers = #tpu.dot_dimension_numbers<[1], [0], [0], [1], [0, 0, 1, 1], [], []>} : vector<16x10xf32>, vector<10x20xf32>, vector<16x20xf32> -> vector<16x20xf32>
    %123 = arith.addf %114, %122 : vector<16x20xf32>
    %c3_67 = arith.constant 3 : index
    %c0_68 = arith.constant 0 : index
    %c0_69 = arith.constant 0 : index
    %124 = vector.load %arg4[%c3_67, %c0_68, %c0_69] : memref<9x10x20xf32, #tpu.memory_space<vmem>>, vector<1x10x20xf32>
    %125 = vector.shape_cast %124 : vector<1x10x20xf32> to vector<10x20xf32>
    %cst_70 = arith.constant dense<0.000000e+00> : vector<16x20xf32>
    %126 = tpu.matmul %71, %125, %cst_70 {dimension_numbers = #tpu.dot_dimension_numbers<[1], [0], [0], [1], [0, 0, 1, 1], [], []>} : vector<16x10xf32>, vector<10x20xf32>, vector<16x20xf32> -> vector<16x20xf32>
    %127 = arith.addf %123, %126 : vector<16x20xf32>
    %128 = vector.extract_strided_slice %15 {offsets = [32, 0], sizes = [16, 10], strides = [1, 1]} : vector<256x10xf32> to vector<16x10xf32>
    %c4_71 = arith.constant 4 : index
    %c0_72 = arith.constant 0 : index
    %c0_73 = arith.constant 0 : index
    %129 = vector.load %arg4[%c4_71, %c0_72, %c0_73] : memref<9x10x20xf32, #tpu.memory_space<vmem>>, vector<1x10x20xf32>
    %130 = vector.shape_cast %129 : vector<1x10x20xf32> to vector<10x20xf32>
    %cst_74 = arith.constant dense<0.000000e+00> : vector<16x20xf32>
    %131 = tpu.matmul %128, %130, %cst_74 {dimension_numbers = #tpu.dot_dimension_numbers<[1], [0], [0], [1], [0, 0, 1, 1], [], []>} : vector<16x10xf32>, vector<10x20xf32>, vector<16x20xf32> -> vector<16x20xf32>
    %132 = arith.addf %127, %131 : vector<16x20xf32>
    %133 = vector.extract_strided_slice %15 {offsets = [48, 0], sizes = [16, 10], strides = [1, 1]} : vector<256x10xf32> to vector<16x10xf32>
    %c5_75 = arith.constant 5 : index
    %c0_76 = arith.constant 0 : index
    %c0_77 = arith.constant 0 : index
    %134 = vector.load %arg4[%c5_75, %c0_76, %c0_77] : memref<9x10x20xf32, #tpu.memory_space<vmem>>, vector<1x10x20xf32>
    %135 = vector.shape_cast %134 : vector<1x10x20xf32> to vector<10x20xf32>
    %cst_78 = arith.constant dense<0.000000e+00> : vector<16x20xf32>
    %136 = tpu.matmul %133, %135, %cst_78 {dimension_numbers = #tpu.dot_dimension_numbers<[1], [0], [0], [1], [0, 0, 1, 1], [], []>} : vector<16x10xf32>, vector<10x20xf32>, vector<16x20xf32> -> vector<16x20xf32>
    %137 = arith.addf %132, %136 : vector<16x20xf32>
    %c6_79 = arith.constant 6 : index
    %c0_80 = arith.constant 0 : index
    %c0_81 = arith.constant 0 : index
    %138 = vector.load %arg4[%c6_79, %c0_80, %c0_81] : memref<9x10x20xf32, #tpu.memory_space<vmem>>, vector<1x10x20xf32>
    %139 = vector.shape_cast %138 : vector<1x10x20xf32> to vector<10x20xf32>
    %cst_82 = arith.constant dense<0.000000e+00> : vector<16x20xf32>
    %140 = tpu.matmul %96, %139, %cst_82 {dimension_numbers = #tpu.dot_dimension_numbers<[1], [0], [0], [1], [0, 0, 1, 1], [], []>} : vector<16x10xf32>, vector<10x20xf32>, vector<16x20xf32> -> vector<16x20xf32>
    %141 = arith.addf %137, %140 : vector<16x20xf32>
    %142 = vector.extract_strided_slice %15 {offsets = [96, 0], sizes = [16, 10], strides = [1, 1]} : vector<256x10xf32> to vector<16x10xf32>
    %c7_83 = arith.constant 7 : index
    %c0_84 = arith.constant 0 : index
    %c0_85 = arith.constant 0 : index
    %143 = vector.load %arg4[%c7_83, %c0_84, %c0_85] : memref<9x10x20xf32, #tpu.memory_space<vmem>>, vector<1x10x20xf32>
    %144 = vector.shape_cast %143 : vector<1x10x20xf32> to vector<10x20xf32>
    %cst_86 = arith.constant dense<0.000000e+00> : vector<16x20xf32>
    %145 = tpu.matmul %142, %144, %cst_86 {dimension_numbers = #tpu.dot_dimension_numbers<[1], [0], [0], [1], [0, 0, 1, 1], [], []>} : vector<16x10xf32>, vector<10x20xf32>, vector<16x20xf32> -> vector<16x20xf32>
    %146 = arith.addf %141, %145 : vector<16x20xf32>
    %147 = vector.extract_strided_slice %15 {offsets = [112, 0], sizes = [16, 10], strides = [1, 1]} : vector<256x10xf32> to vector<16x10xf32>
    %c8_87 = arith.constant 8 : index
    %c0_88 = arith.constant 0 : index
    %c0_89 = arith.constant 0 : index
    %148 = vector.load %arg4[%c8_87, %c0_88, %c0_89] : memref<9x10x20xf32, #tpu.memory_space<vmem>>, vector<1x10x20xf32>
    %149 = vector.shape_cast %148 : vector<1x10x20xf32> to vector<10x20xf32>
    %cst_90 = arith.constant dense<0.000000e+00> : vector<16x20xf32>
    %150 = tpu.matmul %147, %149, %cst_90 {dimension_numbers = #tpu.dot_dimension_numbers<[1], [0], [0], [1], [0, 0, 1, 1], [], []>} : vector<16x10xf32>, vector<10x20xf32>, vector<16x20xf32> -> vector<16x20xf32>
    %151 = arith.addf %146, %150 : vector<16x20xf32>
    %152 = arith.maximumf %100, %151 : vector<16x20xf32>
    %cst_91 = arith.constant 0.000000e+00 : f32
    %153 = vector.broadcast %cst_91 : f32 to vector<16x20xf32>
    %c0_92 = arith.constant 0 : index
    %c0_93 = arith.constant 0 : index
    %c0_94 = arith.constant 0 : index
    %154 = vector.load %arg4[%c0_92, %c0_93, %c0_94] : memref<9x10x20xf32, #tpu.memory_space<vmem>>, vector<1x10x20xf32>
    %155 = vector.shape_cast %154 : vector<1x10x20xf32> to vector<10x20xf32>
    %cst_95 = arith.constant dense<0.000000e+00> : vector<16x20xf32>
    %156 = tpu.matmul %86, %155, %cst_95 {dimension_numbers = #tpu.dot_dimension_numbers<[1], [0], [0], [1], [0, 0, 1, 1], [], []>} : vector<16x10xf32>, vector<10x20xf32>, vector<16x20xf32> -> vector<16x20xf32>
    %157 = arith.addf %153, %156 : vector<16x20xf32>
    %c1_96 = arith.constant 1 : index
    %c0_97 = arith.constant 0 : index
    %c0_98 = arith.constant 0 : index
    %158 = vector.load %arg4[%c1_96, %c0_97, %c0_98] : memref<9x10x20xf32, #tpu.memory_space<vmem>>, vector<1x10x20xf32>
    %159 = vector.shape_cast %158 : vector<1x10x20xf32> to vector<10x20xf32>
    %cst_99 = arith.constant dense<0.000000e+00> : vector<16x20xf32>
    %160 = tpu.matmul %91, %159, %cst_99 {dimension_numbers = #tpu.dot_dimension_numbers<[1], [0], [0], [1], [0, 0, 1, 1], [], []>} : vector<16x10xf32>, vector<10x20xf32>, vector<16x20xf32> -> vector<16x20xf32>
    %161 = arith.addf %157, %160 : vector<16x20xf32>
    %c2_100 = arith.constant 2 : index
    %c0_101 = arith.constant 0 : index
    %c0_102 = arith.constant 0 : index
    %162 = vector.load %arg4[%c2_100, %c0_101, %c0_102] : memref<9x10x20xf32, #tpu.memory_space<vmem>>, vector<1x10x20xf32>
    %163 = vector.shape_cast %162 : vector<1x10x20xf32> to vector<10x20xf32>
    %cst_103 = arith.constant dense<0.000000e+00> : vector<16x20xf32>
    %164 = tpu.matmul %96, %163, %cst_103 {dimension_numbers = #tpu.dot_dimension_numbers<[1], [0], [0], [1], [0, 0, 1, 1], [], []>} : vector<16x10xf32>, vector<10x20xf32>, vector<16x20xf32> -> vector<16x20xf32>
    %165 = arith.addf %161, %164 : vector<16x20xf32>
    %166 = vector.extract_strided_slice %15 {offsets = [175, 0], sizes = [16, 10], strides = [1, 1]} : vector<256x10xf32> to vector<16x10xf32>
    %c1_i32_104 = arith.constant 1 : i32
    %167 = vector.broadcast %c1_i32_104 : i32 to vector<16x10xi32>
    %168 = arith.cmpi sge, %16, %167 : vector<16x10xi32>
    %cst_105 = arith.constant 0.000000e+00 : f32
    %169 = vector.broadcast %cst_105 : f32 to vector<16x10xf32>
    %170 = arith.select %168, %166, %169 : vector<16x10xi1>, vector<16x10xf32>
    %c3_i32_106 = arith.constant 3 : i32
    %171 = vector.broadcast %c3_i32_106 : i32 to vector<16x10xi32>
    %172 = arith.andi %16, %171 : vector<16x10xi32>
    %c0_i32_107 = arith.constant 0 : i32
    %173 = vector.broadcast %c0_i32_107 : i32 to vector<16x10xi32>
    %174 = arith.cmpi ne, %172, %173 : vector<16x10xi32>
    %cst_108 = arith.constant 0.000000e+00 : f32
    %175 = vector.broadcast %cst_108 : f32 to vector<16x10xf32>
    %176 = arith.select %174, %170, %175 : vector<16x10xi1>, vector<16x10xf32>
    %c3_109 = arith.constant 3 : index
    %c0_110 = arith.constant 0 : index
    %c0_111 = arith.constant 0 : index
    %177 = vector.load %arg4[%c3_109, %c0_110, %c0_111] : memref<9x10x20xf32, #tpu.memory_space<vmem>>, vector<1x10x20xf32>
    %178 = vector.shape_cast %177 : vector<1x10x20xf32> to vector<10x20xf32>
    %cst_112 = arith.constant dense<0.000000e+00> : vector<16x20xf32>
    %179 = tpu.matmul %176, %178, %cst_112 {dimension_numbers = #tpu.dot_dimension_numbers<[1], [0], [0], [1], [0, 0, 1, 1], [], []>} : vector<16x10xf32>, vector<10x20xf32>, vector<16x20xf32> -> vector<16x20xf32>
    %180 = arith.addf %165, %179 : vector<16x20xf32>
    %181 = vector.extract_strided_slice %15 {offsets = [128, 0], sizes = [16, 10], strides = [1, 1]} : vector<256x10xf32> to vector<16x10xf32>
    %c4_113 = arith.constant 4 : index
    %c0_114 = arith.constant 0 : index
    %c0_115 = arith.constant 0 : index
    %182 = vector.load %arg4[%c4_113, %c0_114, %c0_115] : memref<9x10x20xf32, #tpu.memory_space<vmem>>, vector<1x10x20xf32>
    %183 = vector.shape_cast %182 : vector<1x10x20xf32> to vector<10x20xf32>
    %cst_116 = arith.constant dense<0.000000e+00> : vector<16x20xf32>
    %184 = tpu.matmul %181, %183, %cst_116 {dimension_numbers = #tpu.dot_dimension_numbers<[1], [0], [0], [1], [0, 0, 1, 1], [], []>} : vector<16x10xf32>, vector<10x20xf32>, vector<16x20xf32> -> vector<16x20xf32>
    %185 = arith.addf %180, %184 : vector<16x20xf32>
    %186 = vector.extract_strided_slice %15 {offsets = [144, 0], sizes = [16, 10], strides = [1, 1]} : vector<256x10xf32> to vector<16x10xf32>
    %c5_117 = arith.constant 5 : index
    %c0_118 = arith.constant 0 : index
    %c0_119 = arith.constant 0 : index
    %187 = vector.load %arg4[%c5_117, %c0_118, %c0_119] : memref<9x10x20xf32, #tpu.memory_space<vmem>>, vector<1x10x20xf32>
    %188 = vector.shape_cast %187 : vector<1x10x20xf32> to vector<10x20xf32>
    %cst_120 = arith.constant dense<0.000000e+00> : vector<16x20xf32>
    %189 = tpu.matmul %186, %188, %cst_120 {dimension_numbers = #tpu.dot_dimension_numbers<[1], [0], [0], [1], [0, 0, 1, 1], [], []>} : vector<16x10xf32>, vector<10x20xf32>, vector<16x20xf32> -> vector<16x20xf32>
    %190 = arith.addf %185, %189 : vector<16x20xf32>
    %191 = vector.extract_strided_slice %15 {offsets = [239, 0], sizes = [16, 10], strides = [1, 1]} : vector<256x10xf32> to vector<16x10xf32>
    %c1_i32_121 = arith.constant 1 : i32
    %192 = vector.broadcast %c1_i32_121 : i32 to vector<16x10xi32>
    %193 = arith.cmpi sge, %16, %192 : vector<16x10xi32>
    %cst_122 = arith.constant 0.000000e+00 : f32
    %194 = vector.broadcast %cst_122 : f32 to vector<16x10xf32>
    %195 = arith.select %193, %191, %194 : vector<16x10xi1>, vector<16x10xf32>
    %c3_i32_123 = arith.constant 3 : i32
    %196 = vector.broadcast %c3_i32_123 : i32 to vector<16x10xi32>
    %197 = arith.andi %16, %196 : vector<16x10xi32>
    %c0_i32_124 = arith.constant 0 : i32
    %198 = vector.broadcast %c0_i32_124 : i32 to vector<16x10xi32>
    %199 = arith.cmpi ne, %197, %198 : vector<16x10xi32>
    %cst_125 = arith.constant 0.000000e+00 : f32
    %200 = vector.broadcast %cst_125 : f32 to vector<16x10xf32>
    %201 = arith.select %199, %195, %200 : vector<16x10xi1>, vector<16x10xf32>
    %c6_126 = arith.constant 6 : index
    %c0_127 = arith.constant 0 : index
    %c0_128 = arith.constant 0 : index
    %202 = vector.load %arg4[%c6_126, %c0_127, %c0_128] : memref<9x10x20xf32, #tpu.memory_space<vmem>>, vector<1x10x20xf32>
    %203 = vector.shape_cast %202 : vector<1x10x20xf32> to vector<10x20xf32>
    %cst_129 = arith.constant dense<0.000000e+00> : vector<16x20xf32>
    %204 = tpu.matmul %201, %203, %cst_129 {dimension_numbers = #tpu.dot_dimension_numbers<[1], [0], [0], [1], [0, 0, 1, 1], [], []>} : vector<16x10xf32>, vector<10x20xf32>, vector<16x20xf32> -> vector<16x20xf32>
    %205 = arith.addf %190, %204 : vector<16x20xf32>
    %206 = vector.extract_strided_slice %15 {offsets = [192, 0], sizes = [16, 10], strides = [1, 1]} : vector<256x10xf32> to vector<16x10xf32>
    %c7_130 = arith.constant 7 : index
    %c0_131 = arith.constant 0 : index
    %c0_132 = arith.constant 0 : index
    %207 = vector.load %arg4[%c7_130, %c0_131, %c0_132] : memref<9x10x20xf32, #tpu.memory_space<vmem>>, vector<1x10x20xf32>
    %208 = vector.shape_cast %207 : vector<1x10x20xf32> to vector<10x20xf32>
    %cst_133 = arith.constant dense<0.000000e+00> : vector<16x20xf32>
    %209 = tpu.matmul %206, %208, %cst_133 {dimension_numbers = #tpu.dot_dimension_numbers<[1], [0], [0], [1], [0, 0, 1, 1], [], []>} : vector<16x10xf32>, vector<10x20xf32>, vector<16x20xf32> -> vector<16x20xf32>
    %210 = arith.addf %205, %209 : vector<16x20xf32>
    %211 = vector.extract_strided_slice %15 {offsets = [208, 0], sizes = [16, 10], strides = [1, 1]} : vector<256x10xf32> to vector<16x10xf32>
    %c8_134 = arith.constant 8 : index
    %c0_135 = arith.constant 0 : index
    %c0_136 = arith.constant 0 : index
    %212 = vector.load %arg4[%c8_134, %c0_135, %c0_136] : memref<9x10x20xf32, #tpu.memory_space<vmem>>, vector<1x10x20xf32>
    %213 = vector.shape_cast %212 : vector<1x10x20xf32> to vector<10x20xf32>
    %cst_137 = arith.constant dense<0.000000e+00> : vector<16x20xf32>
    %214 = tpu.matmul %211, %213, %cst_137 {dimension_numbers = #tpu.dot_dimension_numbers<[1], [0], [0], [1], [0, 0, 1, 1], [], []>} : vector<16x10xf32>, vector<10x20xf32>, vector<16x20xf32> -> vector<16x20xf32>
    %215 = arith.addf %210, %214 : vector<16x20xf32>
    %216 = arith.maximumf %152, %215 : vector<16x20xf32>
    %cst_138 = arith.constant 0.000000e+00 : f32
    %217 = vector.broadcast %cst_138 : f32 to vector<16x20xf32>
    %c0_139 = arith.constant 0 : index
    %c0_140 = arith.constant 0 : index
    %c0_141 = arith.constant 0 : index
    %218 = vector.load %arg4[%c0_139, %c0_140, %c0_141] : memref<9x10x20xf32, #tpu.memory_space<vmem>>, vector<1x10x20xf32>
    %219 = vector.shape_cast %218 : vector<1x10x20xf32> to vector<10x20xf32>
    %cst_142 = arith.constant dense<0.000000e+00> : vector<16x20xf32>
    %220 = tpu.matmul %96, %219, %cst_142 {dimension_numbers = #tpu.dot_dimension_numbers<[1], [0], [0], [1], [0, 0, 1, 1], [], []>} : vector<16x10xf32>, vector<10x20xf32>, vector<16x20xf32> -> vector<16x20xf32>
    %221 = arith.addf %217, %220 : vector<16x20xf32>
    %c1_143 = arith.constant 1 : index
    %c0_144 = arith.constant 0 : index
    %c0_145 = arith.constant 0 : index
    %222 = vector.load %arg4[%c1_143, %c0_144, %c0_145] : memref<9x10x20xf32, #tpu.memory_space<vmem>>, vector<1x10x20xf32>
    %223 = vector.shape_cast %222 : vector<1x10x20xf32> to vector<10x20xf32>
    %cst_146 = arith.constant dense<0.000000e+00> : vector<16x20xf32>
    %224 = tpu.matmul %142, %223, %cst_146 {dimension_numbers = #tpu.dot_dimension_numbers<[1], [0], [0], [1], [0, 0, 1, 1], [], []>} : vector<16x10xf32>, vector<10x20xf32>, vector<16x20xf32> -> vector<16x20xf32>
    %225 = arith.addf %221, %224 : vector<16x20xf32>
    %c2_147 = arith.constant 2 : index
    %c0_148 = arith.constant 0 : index
    %c0_149 = arith.constant 0 : index
    %226 = vector.load %arg4[%c2_147, %c0_148, %c0_149] : memref<9x10x20xf32, #tpu.memory_space<vmem>>, vector<1x10x20xf32>
    %227 = vector.shape_cast %226 : vector<1x10x20xf32> to vector<10x20xf32>
    %cst_150 = arith.constant dense<0.000000e+00> : vector<16x20xf32>
    %228 = tpu.matmul %147, %227, %cst_150 {dimension_numbers = #tpu.dot_dimension_numbers<[1], [0], [0], [1], [0, 0, 1, 1], [], []>} : vector<16x10xf32>, vector<10x20xf32>, vector<16x20xf32> -> vector<16x20xf32>
    %229 = arith.addf %225, %228 : vector<16x20xf32>
    %c3_151 = arith.constant 3 : index
    %c0_152 = arith.constant 0 : index
    %c0_153 = arith.constant 0 : index
    %230 = vector.load %arg4[%c3_151, %c0_152, %c0_153] : memref<9x10x20xf32, #tpu.memory_space<vmem>>, vector<1x10x20xf32>
    %231 = vector.shape_cast %230 : vector<1x10x20xf32> to vector<10x20xf32>
    %cst_154 = arith.constant dense<0.000000e+00> : vector<16x20xf32>
    %232 = tpu.matmul %186, %231, %cst_154 {dimension_numbers = #tpu.dot_dimension_numbers<[1], [0], [0], [1], [0, 0, 1, 1], [], []>} : vector<16x10xf32>, vector<10x20xf32>, vector<16x20xf32> -> vector<16x20xf32>
    %233 = arith.addf %229, %232 : vector<16x20xf32>
    %234 = vector.extract_strided_slice %15 {offsets = [160, 0], sizes = [16, 10], strides = [1, 1]} : vector<256x10xf32> to vector<16x10xf32>
    %c4_155 = arith.constant 4 : index
    %c0_156 = arith.constant 0 : index
    %c0_157 = arith.constant 0 : index
    %235 = vector.load %arg4[%c4_155, %c0_156, %c0_157] : memref<9x10x20xf32, #tpu.memory_space<vmem>>, vector<1x10x20xf32>
    %236 = vector.shape_cast %235 : vector<1x10x20xf32> to vector<10x20xf32>
    %cst_158 = arith.constant dense<0.000000e+00> : vector<16x20xf32>
    %237 = tpu.matmul %234, %236, %cst_158 {dimension_numbers = #tpu.dot_dimension_numbers<[1], [0], [0], [1], [0, 0, 1, 1], [], []>} : vector<16x10xf32>, vector<10x20xf32>, vector<16x20xf32> -> vector<16x20xf32>
    %238 = arith.addf %233, %237 : vector<16x20xf32>
    %239 = vector.extract_strided_slice %15 {offsets = [176, 0], sizes = [16, 10], strides = [1, 1]} : vector<256x10xf32> to vector<16x10xf32>
    %c5_159 = arith.constant 5 : index
    %c0_160 = arith.constant 0 : index
    %c0_161 = arith.constant 0 : index
    %240 = vector.load %arg4[%c5_159, %c0_160, %c0_161] : memref<9x10x20xf32, #tpu.memory_space<vmem>>, vector<1x10x20xf32>
    %241 = vector.shape_cast %240 : vector<1x10x20xf32> to vector<10x20xf32>
    %cst_162 = arith.constant dense<0.000000e+00> : vector<16x20xf32>
    %242 = tpu.matmul %239, %241, %cst_162 {dimension_numbers = #tpu.dot_dimension_numbers<[1], [0], [0], [1], [0, 0, 1, 1], [], []>} : vector<16x10xf32>, vector<10x20xf32>, vector<16x20xf32> -> vector<16x20xf32>
    %243 = arith.addf %238, %242 : vector<16x20xf32>
    %c6_163 = arith.constant 6 : index
    %c0_164 = arith.constant 0 : index
    %c0_165 = arith.constant 0 : index
    %244 = vector.load %arg4[%c6_163, %c0_164, %c0_165] : memref<9x10x20xf32, #tpu.memory_space<vmem>>, vector<1x10x20xf32>
    %245 = vector.shape_cast %244 : vector<1x10x20xf32> to vector<10x20xf32>
    %cst_166 = arith.constant dense<0.000000e+00> : vector<16x20xf32>
    %246 = tpu.matmul %211, %245, %cst_166 {dimension_numbers = #tpu.dot_dimension_numbers<[1], [0], [0], [1], [0, 0, 1, 1], [], []>} : vector<16x10xf32>, vector<10x20xf32>, vector<16x20xf32> -> vector<16x20xf32>
    %247 = arith.addf %243, %246 : vector<16x20xf32>
    %248 = vector.extract_strided_slice %15 {offsets = [224, 0], sizes = [16, 10], strides = [1, 1]} : vector<256x10xf32> to vector<16x10xf32>
    %c7_167 = arith.constant 7 : index
    %c0_168 = arith.constant 0 : index
    %c0_169 = arith.constant 0 : index
    %249 = vector.load %arg4[%c7_167, %c0_168, %c0_169] : memref<9x10x20xf32, #tpu.memory_space<vmem>>, vector<1x10x20xf32>
    %250 = vector.shape_cast %249 : vector<1x10x20xf32> to vector<10x20xf32>
    %cst_170 = arith.constant dense<0.000000e+00> : vector<16x20xf32>
    %251 = tpu.matmul %248, %250, %cst_170 {dimension_numbers = #tpu.dot_dimension_numbers<[1], [0], [0], [1], [0, 0, 1, 1], [], []>} : vector<16x10xf32>, vector<10x20xf32>, vector<16x20xf32> -> vector<16x20xf32>
    %252 = arith.addf %247, %251 : vector<16x20xf32>
    %253 = vector.extract_strided_slice %15 {offsets = [240, 0], sizes = [16, 10], strides = [1, 1]} : vector<256x10xf32> to vector<16x10xf32>
    %c8_171 = arith.constant 8 : index
    %c0_172 = arith.constant 0 : index
    %c0_173 = arith.constant 0 : index
    %254 = vector.load %arg4[%c8_171, %c0_172, %c0_173] : memref<9x10x20xf32, #tpu.memory_space<vmem>>, vector<1x10x20xf32>
    %255 = vector.shape_cast %254 : vector<1x10x20xf32> to vector<10x20xf32>
    %cst_174 = arith.constant dense<0.000000e+00> : vector<16x20xf32>
    %256 = tpu.matmul %253, %255, %cst_174 {dimension_numbers = #tpu.dot_dimension_numbers<[1], [0], [0], [1], [0, 0, 1, 1], [], []>} : vector<16x10xf32>, vector<10x20xf32>, vector<16x20xf32> -> vector<16x20xf32>
    %257 = arith.addf %252, %256 : vector<16x20xf32>
    %258 = arith.maximumf %216, %257 : vector<16x20xf32>
    %c0_175 = arith.constant 0 : index
    %c0_176 = arith.constant 0 : index
    %259 = vector.load %arg5[%c0_175, %c0_176] : memref<1x20xf32, #tpu.memory_space<vmem>>, vector<1x20xf32>
    %260 = vector.broadcast %259 : vector<1x20xf32> to vector<16x20xf32>
    %261 = arith.addf %258, %260 : vector<16x20xf32>
    %cst_177 = arith.constant 0.000000e+00 : f32
    %262 = vector.broadcast %cst_177 : f32 to vector<16x20xf32>
    %263 = arith.maximumf %261, %262 : vector<16x20xf32>
    %c0_178 = arith.constant 0 : index
    %c0_179 = arith.constant 0 : index
    %264 = vector.load %arg6[%c0_178, %c0_179] : memref<16x20xf32, #tpu.memory_space<vmem>>, vector<16x20xf32>
    %265 = arith.mulf %263, %264 : vector<16x20xf32>
    %cst_180 = arith.constant dense<0.000000e+00> : vector<20xf32>
    %266 = vector.multi_reduction <add>, %265, %cst_180 [0] : vector<16x20xf32> to vector<20xf32>
    %267 = vector.shape_cast %266 : vector<20xf32> to vector<1x20xf32>
    %cst_181 = arith.constant dense<0.000000e+00> : vector<1xf32>
    %268 = vector.multi_reduction <add>, %267, %cst_181 [1] : vector<1x20xf32> to vector<1xf32>
    %269 = vector.shape_cast %268 : vector<1xf32> to vector<1x1xf32>
    %c0_182 = arith.constant 0 : index
    %c0_183 = arith.constant 0 : index
    %270 = vector.load %arg7[%c0_182, %c0_183] : memref<1x1xf32, #tpu.memory_space<vmem>>, vector<1x1xf32>
    %271 = arith.addf %269, %270 : vector<1x1xf32>
    %cst_184 = arith.constant 0.000000e+00 : f32
    %272 = vector.broadcast %cst_184 : f32 to vector<1x1xf32>
    %273 = arith.subf %272, %271 : vector<1x1xf32>
    %274 = math.exp %273 : vector<1x1xf32>
    %cst_185 = arith.constant 1.000000e+00 : f32
    %275 = vector.broadcast %cst_185 : f32 to vector<1x1xf32>
    %276 = arith.addf %275, %274 : vector<1x1xf32>
    %cst_186 = arith.constant 1.000000e+00 : f32
    %277 = vector.broadcast %cst_186 : f32 to vector<1x1xf32>
    %278 = arith.divf %277, %276 : vector<1x1xf32>
    %c0_187 = arith.constant 0 : index
    %c0_188 = arith.constant 0 : index
    %c0_189 = arith.constant 0 : index
    %279 = vector.load %arg8[%c0_187, %c0_188, %c0_189] : memref<1x1x1xf32, #tpu.memory_space<vmem>>, vector<1x1x1xf32>
    %280 = vector.shape_cast %279 : vector<1x1x1xf32> to vector<1x1xf32>
    %281 = vector.shape_cast %278 : vector<1x1xf32> to vector<1x1x1xf32>
    tpu.vector_store %arg8[%c0_187, %c0_188, %c0_189], %281 {strides = array<i32>} : memref<1x1x1xf32, #tpu.memory_space<vmem>>, vector<1x1x1xf32>,
    return
  }
  func.func @transform_0(%arg0: i32) -> (i32, i32, i32) {
    %c0_i32 = arith.constant 0 : i32
    %c0_i32_0 = arith.constant 0 : i32
    %c0_i32_1 = arith.constant 0 : i32
    return %arg0, %c0_i32, %c0_i32_0 : i32, i32, i32
  }
  func.func @transform_1(%arg0: i32) -> (i32, i32) {
    %c0_i32 = arith.constant 0 : i32
    %c0_i32_0 = arith.constant 0 : i32
    %c0_i32_1 = arith.constant 0 : i32
    return %c0_i32, %c0_i32_0 : i32, i32
  }
  func.func @transform_2(%arg0: i32) -> (i32, i32) {
    %c0_i32 = arith.constant 0 : i32
    %c0_i32_0 = arith.constant 0 : i32
    %c0_i32_1 = arith.constant 0 : i32
    return %c0_i32, %c0_i32_0 : i32, i32
  }
  func.func @transform_3(%arg0: i32) -> (i32, i32, i32) {
    %c0_i32 = arith.constant 0 : i32
    %c0_i32_0 = arith.constant 0 : i32
    %c0_i32_1 = arith.constant 0 : i32
    %c0_i32_2 = arith.constant 0 : i32
    return %c0_i32, %c0_i32_0, %c0_i32_1 : i32, i32, i32
  }
  func.func @transform_4(%arg0: i32) -> (i32, i32) {
    %c0_i32 = arith.constant 0 : i32
    %c0_i32_0 = arith.constant 0 : i32
    %c0_i32_1 = arith.constant 0 : i32
    return %c0_i32, %c0_i32_0 : i32, i32
  }
  func.func @transform_5(%arg0: i32) -> (i32, i32) {
    %c0_i32 = arith.constant 0 : i32
    %c0_i32_0 = arith.constant 0 : i32
    %c0_i32_1 = arith.constant 0 : i32
    return %c0_i32, %c0_i32_0 : i32, i32
  }
  func.func @transform_6(%arg0: i32) -> (i32, i32) {
    %c0_i32 = arith.constant 0 : i32
    %c0_i32_0 = arith.constant 0 : i32
    %c0_i32_1 = arith.constant 0 : i32
    return %c0_i32, %c0_i32_0 : i32, i32
  }
  func.func @transform_7(%arg0: i32) -> (i32, i32, i32) {
    %c0_i32 = arith.constant 0 : i32
    %c0_i32_0 = arith.constant 0 : i32
    %c0_i32_1 = arith.constant 0 : i32
    return %arg0, %c0_i32, %c0_i32_0 : i32, i32, i32
  }
}

</mosaic_0001>

<bundles_post_ra>
// kernel: net_forward.1
= control target key start
LH: loop header
LB: loop body
LE: loop exit
PB: predicated region body
PF: predicated region fallthrough
CT: control target
= control target key end

     0   :  { %s5805_s26 = smov 0   ;;  %s7074_s0 = inlined_call_operand.vmem [shape: bf16[2,1024,27], index: 0, kind: input, shape index: {}]   ;;  %s7075_s1 = inlined_call_operand.vmem [shape: bf16[27,10], index: 1, kind: input, shape index: {}]   ;;  %s7076_s2 = inlined_call_operand.vmem [shape: f32[1,10], index: 2, kind: input, shape index: {}]   ;;  %s7077_s3 = inlined_call_operand.vmem [shape: f32[9,10,20], index: 3, kind: input, shape index: {}]   ;;  %s7078_s4 = inlined_call_operand.vmem [shape: f32[1,20], index: 4, kind: input, shape index: {}]   ;;  %s7079_s5 = inlined_call_operand.vmem [shape: f32[16,20], index: 5, kind: input, shape index: {}]   ;;  %s7080_s6 = inlined_call_operand.<no memory space> [shape: f32[1,1], index: 6, kind: input, shape index: {}]   ;;  %s7081_s7 = inlined_call_operand.vmem [shape: f32[2,1,1], index: 7, kind: output, shape index: {}]  }
   0x1   :  { %v12_v0 = vstv %s7080_s6 }
   0x2   :  { %13 = vst [vmem:[#allocation2] sm:$0x1] %v12_v0 }
   0x3 LB: > { %s4808_s27 = sadd.s32 4294967295, %s5759_s26   ;;  %p4812_p0 = scmp.ge.s32.totalorder %s5759_s26, 1  ;;  %s5759_s26 = sphi %s5805_s26, %s19_s26  }
   0x4   : > { %p239_p1 = scmp.lt.s32.totalorder %s5759_s26, 3 }
   0x6   : > { %p240_p2 = pnand %p4812_p0, %p239_p1 }
   0x8   : > { %243 = sbr.rel (%p240_p2) target bundleno = 955 (0x3bb), region = 48 }
   0xd   : > { %v5681_v1 = vld [vmem:[%s7075_s1 + $0x8] sm:$0x3f]   ;;  %vm934_vm0 = vcmask 1044480   ;;  %vm935_vm1 = vcmask 1045504   ;;  %v5761_v2 = vmov 65535   ;;  %p269_p3 = scmp.lt.s32.totalorder %s4808_s27, 1 }
   0xe   : > { %v936_v3 = vsel %vm934_vm0, 4294967295, %v5761_v2  ;;  %v5682_v6 = vld [vmem:[%s7075_s1] sm:$0xff]   ;;  %vm741_vm2 = vcmask 220160   ;;  %vm1703_vm3 = vcmask 1041408   ;;  %vm1970_vm4 = vcmask 1040384  }
   0xf   : > { %v937_v4 = vsel %vm935_vm1, %v936_v3, 0  ;;  %s7248_s27 = smov (!%p269_p3, %s4808_s27), 1  ;;  %vm1683_vm7 = vcmask 1043456   ;;  %vm1696_vm10 = vcmask 80896   ;;  %vm4738_vm12 = vcmask 162816  }
  0x10   : > { %v939_v5 = vand.u32 %v5681_v1, %v937_v4  ;;  %s5073_s8 = sshll.u32 %s7248_s27, 9  ;;  %s276_s18 = scalar_lea.vmem %s7081_s7, %s7248_s27  ;;  %vm4759_vm13 = vcmask 0  }
  0x11   : > { %s5826_s11 = scalar_lea.vmem %s7074_s0, %s5073_s8 }
  0x12   : > { %5284 = vmatprep.subr.bf16.mxu0 %v939_v5  ;;  %5668 = vmatprep.subr.bf16.mxu1 %v939_v5  ;;  %v5683_v7 = vld [vmem:[%s5826_s11] sm:$0xff]   ;;  %v5684_v8 = vld [vmem:[%s5826_s11 + $0x8] sm:$0xff]   ;;  %v5685_v9 = vld [vmem:[%s5826_s11 + $0x10] sm:$0xff]  }
  0x13   : > { %5285 = vmatpush3.bf16.msra.mxu0 %v939_v5  ;;  %5670 = vmatpush3.bf16.msra.mxu1 %v939_v5  ;;  %v5686_v10 = vld [vmem:[%s5826_s11 + $0x18] sm:$0xff]   ;;  %v5687_v11 = vld [vmem:[%s5826_s11 + $0x20] sm:$0xff]   ;;  %v5688_v12 = vld [vmem:[%s5826_s11 + $0x28] sm:$0xff]  }
  0x14   : > { %5286 = vmatprep.subr.bf16.mxu0 %v5682_v6  ;;  %5669 = vmatprep.subr.bf16.mxu1 %v5682_v6  ;;  %v5689_v13 = vld [vmem:[%s5826_s11 + $0x30] sm:$0xff]   ;;  %v5690_v14 = vld [vmem:[%s5826_s11 + $0x38] sm:$0xff]   ;;  %v5691_v15 = vld [vmem:[%s5826_s11 + $0x40] sm:$0xff]  }
  0x15   : > { %5288 = vmatprep.mubr.msk.bf16.mxu0 %vm741_vm2, %v5683_v7  ;;  %v5692_v16 = vld [vmem:[%s5826_s11 + $0x48] sm:$0xff]   ;;  %v5693_v17 = vld [vmem:[%s5826_s11 + $0x50] sm:$0xff]   ;;  %v5718_v19 = vld [vmem:[%s5826_s11 + $0x198] sm:$0xff]  }
  0x16   : > { %v5717_v18 = vld [vmem:[%s5826_s11 + $0x190] sm:$0xff]   ;;  %v5721_v20 = vld [vmem:[%s5826_s11 + $0x1a0] sm:$0xff]   ;;  %v5694_v21 = vld [vmem:[%s5826_s11 + $0x58] sm:$0xff]  }
  0x17   : > { %5287 = vmatpush3.bf16.msra.mxu0 %v5682_v6  ;;  %5671 = vmatpush3.bf16.msra.mxu1 %v5682_v6  ;;  %v5722_v22 = vld [vmem:[%s5826_s11 + $0x1a8] sm:$0xff]   ;;  %v5725_v23 = vld [vmem:[%s5826_s11 + $0x1b0] sm:$0xff]   ;;  %v5695_v24 = vld [vmem:[%s5826_s11 + $0x60] sm:$0xff]  }
  0x18   : > { %5388 = vmatprep.mubr.msk.bf16.mxu1 %vm741_vm2, %v5717_v18  ;;  %v5696_v25 = vld [vmem:[%s5826_s11 + $0x68] sm:$0xff]   ;;  %v5726_v26 = vld [vmem:[%s5826_s11 + $0x1b8] sm:$0xff]   ;;  %v5729_v27 = vld [vmem:[%s5826_s11 + $0x1c0] sm:$0xff]  }
  0x19   : > { %v5697_v28 = vld [vmem:[%s5826_s11 + $0x70] sm:$0xff]   ;;  %v5698_v29 = vld [vmem:[%s5826_s11 + $0x78] sm:$0xff]   ;;  %v5730_v30 = vld [vmem:[%s5826_s11 + $0x1c8] sm:$0xff]  }
  0x1a   : > { %5289 = vmatmul.mubr.msk.bf16.vlgmr.msra.gmra.mxu0 %vm741_vm2, %v5684_v8  ;;  %5389 = vmatmul.mubr.msk.bf16.vlgmr.msra.gmra.mxu1 %vm741_vm2, %v5718_v19  ;;  %v5733_v31 = vld [vmem:[%s5826_s11 + $0x1d0] sm:$0xff]   ;;  %v5699_v32 = vld [vmem:[%s5826_s11 + $0x80] sm:$0xff]   ;;  %v5734_v33 = vld [vmem:[%s5826_s11 + $0x1d8] sm:$0xff]  }
  0x1b   : > { %5292 = vmatprep.mubr.msk.bf16.mxu0 %vm741_vm2, %v5685_v9  ;;  %5392 = vmatprep.mubr.msk.bf16.mxu1 %vm741_vm2, %v5721_v20  ;;  %v5700_v34 = vld [vmem:[%s5826_s11 + $0x88] sm:$0xff]   ;;  %v5737_v35 = vld [vmem:[%s5826_s11 + $0x1e0] sm:$0xff]   ;;  %v5701_v36 = vld [vmem:[%s5826_s11 + $0x90] sm:$0xff]  }
  0x1c   : > { %v5738_v37 = vld [vmem:[%s5826_s11 + $0x1e8] sm:$0xff]   ;;  %v5702_v38 = vld [vmem:[%s5826_s11 + $0x98] sm:$0xff]   ;;  %v5741_v39 = vld [vmem:[%s5826_s11 + $0x1f0] sm:$0xff]  }
  0x1d   : > { %v5703_v40 = vld [vmem:[%s5826_s11 + $0xa0] sm:$0xff]   ;;  %v5742_v41 = vld [vmem:[%s5826_s11 + $0x1f8] sm:$0xff]   ;;  %v5704_v42 = vld [vmem:[%s5826_s11 + $0xa8] sm:$0xff]  }
  0x1e   : > { %v5705_v43 = vld [vmem:[%s5826_s11 + $0xb0] sm:$0xff]   ;;  %v5706_v44 = vld [vmem:[%s5826_s11 + $0xb8] sm:$0xff]   ;;  %v5707_v45 = vld [vmem:[%s5826_s11 + $0xc0] sm:$0xff]  }
  0x1f   : > { %v5708_v46 = vld [vmem:[%s5826_s11 + $0xc8] sm:$0xff]   ;;  %v5709_v47 = vld [vmem:[%s5826_s11 + $0xd0] sm:$0xff]   ;;  %v5710_v48 = vld [vmem:[%s5826_s11 + $0xd8] sm:$0xff]  }
  0x20   : > { %v5711_v49 = vld [vmem:[%s5826_s11 + $0xe0] sm:$0xff]   ;;  %v5712_v50 = vld [vmem:[%s5826_s11 + $0xe8] sm:$0xff]   ;;  %v5713_v51 = vld [vmem:[%s5826_s11 + $0xf0] sm:$0xff]  }
  0x21   : > { %v5714_v52 = vld [vmem:[%s5826_s11 + $0xf8] sm:$0xff]   ;;  %v5715_v53 = vld [vmem:[%s5826_s11 + $0x100] sm:$0xff]   ;;  %v5716_v54 = vld [vmem:[%s5826_s11 + $0x108] sm:$0xff]  }
  0x22   : > { %5293 = vmatmul.mubr.msk.bf16.gmra.mxu0 %vm741_vm2, %v5686_v10  ;;  %5393 = vmatmul.mubr.msk.bf16.gmra.mxu1 %vm741_vm2, %v5722_v22  ;;  %v5719_v55 = vld [vmem:[%s5826_s11 + $0x110] sm:$0xff]   ;;  %v5720_v56 = vld [vmem:[%s5826_s11 + $0x118] sm:$0xff]   ;;  %v5723_v57 = vld [vmem:[%s5826_s11 + $0x120] sm:$0xff]  }
  0x23   : > { %5296 = vmatprep.mubr.msk.bf16.mxu0 %vm741_vm2, %v5687_v11  ;;  %5396 = vmatprep.mubr.msk.bf16.mxu1 %vm741_vm2, %v5725_v23  ;;  %v5724_v58 = vld [vmem:[%s5826_s11 + $0x128] sm:$0xff]   ;;  %v5727_v59 = vld [vmem:[%s5826_s11 + $0x130] sm:$0xff]   ;;  %v5728_v60 = vld [vmem:[%s5826_s11 + $0x138] sm:$0xff]  }
  0x24   : > { %v5731_v61 = vld [vmem:[%s5826_s11 + $0x140] sm:$0xff]   ;;  %v5732_v62 = vld [vmem:[%s5826_s11 + $0x148] sm:$0xff]   ;;  %v5735_v63 = vld [vmem:[%s5826_s11 + $0x150] sm:$0xff]  }
  0x25   : > { %v5736_v0 = vld [vmem:[%s5826_s11 + $0x158] sm:$0xff]   ;;  %v5739_v1 = vld [vmem:[%s5826_s11 + $0x160] sm:$0xff]   ;;  %v5740_v2 = vld [vmem:[%s5826_s11 + $0x168] sm:$0xff]  }
  0x26   : > { %v5743_v3 = vld [vmem:[%s5826_s11 + $0x170] sm:$0xff]   ;;  %v5744_v4 = vld [vmem:[%s5826_s11 + $0x178] sm:$0xff]   ;;  %v5745_v5 = vld [vmem:[%s5826_s11 + $0x180] sm:$0xff]  }
  0x27   : > { %v5746_v6 = vld [vmem:[%s5826_s11 + $0x188] sm:$0xff]   ;;  %v5985_v20 = vld [vmem:[%s7077_s3 + $0x18] sm:$0x3] }
  0x28   : > { %7130 = vst [vmem:[#allocation8_spill] sm:$0xff] %v5985_v20  ;;  %5416 = vmatprep.subr.msk.mxu1 %vm1703_vm3, %v5985_v20 }
  0x29   : > { %5417 = vmatpush3.msk.msra.mxu1 %vm1703_vm3, %v5985_v20 }
  0x2a   : > { %5297 = vmatmul.mubr.msk.bf16.gmra.mxu0 %vm741_vm2, %v5688_v12  ;;  %5397 = vmatmul.mubr.msk.bf16.gmra.mxu1 %vm741_vm2, %v5726_v26 }
  0x2b   : > { %5300 = vmatprep.mubr.msk.bf16.mxu0 %vm741_vm2, %v5689_v13  ;;  %5400 = vmatprep.mubr.msk.bf16.mxu1 %vm741_vm2, %v5729_v27 }
  0x32   : > { %5301 = vmatmul.mubr.msk.bf16.gmra.mxu0 %vm741_vm2, %v5690_v14  ;;  %5401 = vmatmul.mubr.msk.bf16.gmra.mxu1 %vm741_vm2, %v5730_v30 }
  0x33   : > { %5304 = vmatprep.mubr.msk.bf16.mxu0 %vm741_vm2, %v5691_v15  ;;  %5404 = vmatprep.mubr.msk.bf16.mxu1 %vm741_vm2, %v5733_v31 }
  0x3a   : > { %5305 = vmatmul.mubr.msk.bf16.gmra.mxu0 %vm741_vm2, %v5692_v16  ;;  %5405 = vmatmul.mubr.msk.bf16.gmra.mxu1 %vm741_vm2, %v5734_v33 }
  0x3b   : > { %5308 = vmatprep.mubr.msk.bf16.mxu0 %vm741_vm2, %v5693_v17  ;;  %5408 = vmatprep.mubr.msk.bf16.mxu1 %vm741_vm2, %v5737_v35  ;;  %v6022_v35 = vld [vmem:[%s7077_s3 + $0x10] sm:$0xff] }
  0x3c   : > { %7134 = vst [vmem:[#allocation12_spill] sm:$0xff] %v6022_v35  ;;  %5418 = vmatprep.subr.mxu1 %v6022_v35 }
  0x3d   : > { %5419 = vmatpush3.msra.mxu1 %v6022_v35 }
  0x42   : > { %5309 = vmatmul.mubr.msk.bf16.gmra.mxu0 %vm741_vm2, %v5694_v21  ;;  %5409 = vmatmul.mubr.msk.bf16.gmra.mxu1 %vm741_vm2, %v5738_v37 }
  0x43   : > { %5312 = vmatprep.mubr.msk.bf16.mxu0 %vm741_vm2, %v5695_v24  ;;  %5412 = vmatprep.mubr.msk.bf16.mxu1 %vm741_vm2, %v5741_v39 }
  0x4a   : > { %5313 = vmatmul.mubr.msk.bf16.gmra.mxu0 %vm741_vm2, %v5696_v25  ;;  %5413 = vmatmul.mubr.msk.bf16.gmra.mxu1 %vm741_vm2, %v5742_v41 }
  0x4b   : > { %5316 = vmatprep.mubr.msk.bf16.mxu0 %vm741_vm2, %v5697_v28 }
  0x52   : > { %5317 = vmatmul.mubr.msk.bf16.gmra.mxu0 %vm741_vm2, %v5698_v29 }
  0x53   : > { %5320 = vmatprep.mubr.msk.bf16.mxu0 %vm741_vm2, %v5699_v32 }
  0x5a   : > { %5321 = vmatmul.mubr.msk.bf16.gmra.mxu0 %vm741_vm2, %v5700_v34 }
  0x5b   : > { %5324 = vmatprep.mubr.msk.bf16.mxu0 %vm741_vm2, %v5701_v36 }
  0x62   : > { %5325 = vmatmul.mubr.msk.bf16.gmra.mxu0 %vm741_vm2, %v5702_v38 }
  0x63   : > { %5328 = vmatprep.mubr.msk.bf16.mxu0 %vm741_vm2, %v5703_v40 }
  0x6a   : > { %5329 = vmatmul.mubr.msk.bf16.gmra.mxu0 %vm741_vm2, %v5704_v42 }
  0x6b   : > { %5332 = vmatprep.mubr.msk.bf16.mxu0 %vm741_vm2, %v5705_v43 }
  0x72   : > { %5333 = vmatmul.mubr.msk.bf16.gmra.mxu0 %vm741_vm2, %v5706_v44 }
  0x73   : > { %5336 = vmatprep.mubr.msk.bf16.mxu0 %vm741_vm2, %v5707_v45 }
  0x7a   : > { %5337 = vmatmul.mubr.msk.bf16.gmra.mxu0 %vm741_vm2, %v5708_v46 }
  0x7b   : > { %5340 = vmatprep.mubr.msk.bf16.mxu0 %vm741_vm2, %v5709_v47 }
  0x82   : > { %5341 = vmatmul.mubr.msk.bf16.gmra.mxu0 %vm741_vm2, %v5710_v48 }
  0x83   : > { %5344 = vmatprep.mubr.msk.bf16.mxu0 %vm741_vm2, %v5711_v49 }
  0x8a   : > { %5345 = vmatmul.mubr.msk.bf16.gmra.mxu0 %vm741_vm2, %v5712_v50 }
  0x8b   : > { %5348 = vmatprep.mubr.msk.bf16.mxu0 %vm741_vm2, %v5713_v51 }
  0x92   : > { %5349 = vmatmul.mubr.msk.bf16.gmra.mxu0 %vm741_vm2, %v5714_v52  ;;  %v6061_v52 = vld [vmem:[%s7077_s3 + $0x8] sm:$0x3] }
  0x93   : > { %5352 = vmatprep.mubr.msk.bf16.mxu0 %vm741_vm2, %v5715_v53  ;;  %7142 = vst [vmem:[#allocation20_spill] sm:$0xff] %v6061_v52  ;;  %5423 = vmatprep.subr.msk.mxu1 %vm1703_vm3, %v6061_v52 }
  0x9a   : > { %5353 = vmatmul.mubr.msk.bf16.gmra.mxu0 %vm741_vm2, %v5716_v54 }
  0x9b   : > { %5356 = vmatprep.mubr.msk.bf16.mxu0 %vm741_vm2, %v5719_v55 }
  0xa2   : > { %5357 = vmatmul.mubr.msk.bf16.gmra.mxu0 %vm741_vm2, %v5720_v56 }
  0xa3   : > { %5360 = vmatprep.mubr.msk.bf16.mxu0 %vm741_vm2, %v5723_v57 }
  0xaa   : > { %5361 = vmatmul.mubr.msk.bf16.gmra.mxu0 %vm741_vm2, %v5724_v58 }
  0xab   : > { %5364 = vmatprep.mubr.msk.bf16.mxu0 %vm741_vm2, %v5727_v59 }
  0xb2   : > { %5365 = vmatmul.mubr.msk.bf16.gmra.mxu0 %vm741_vm2, %v5728_v60 }
  0xb3   : > { %5368 = vmatprep.mubr.msk.bf16.mxu0 %vm741_vm2, %v5731_v61 }
  0xba   : > { %5369 = vmatmul.mubr.msk.bf16.gmra.mxu0 %vm741_vm2, %v5732_v62 }
  0xbb   : > { %5372 = vmatprep.mubr.msk.bf16.mxu0 %vm741_vm2, %v5735_v63 }
  0xc2   : > { %5373 = vmatmul.mubr.msk.bf16.gmra.mxu0 %vm741_vm2, %v5736_v0 }
  0xc3   : > { %5376 = vmatprep.mubr.msk.bf16.mxu0 %vm741_vm2, %v5739_v1 }
  0xca   : > { %5377 = vmatmul.mubr.msk.bf16.gmra.mxu0 %vm741_vm2, %v5740_v2 }
  0xcb   : > { %5380 = vmatprep.mubr.msk.bf16.mxu0 %vm741_vm2, %v5743_v3 }
  0xd2   : > { %5381 = vmatmul.mubr.msk.bf16.gmra.mxu0 %vm741_vm2, %v5744_v4 }
  0xd3   : > { %5384 = vmatprep.mubr.msk.bf16.mxu0 %vm741_vm2, %v5745_v5 }
  0xda   : > { %v5955_v7 = vpop.f32.mrf.mxu0  ;;  %5385 = vmatmul.mubr.msk.bf16.gmra.mxu0 %vm741_vm2, %v5746_v6  ;;  %v6081_v61 = vpop.f32.mrf.mxu1 }
  0xdb   : > { %7125 = vst [vmem:[#allocation3_spill] sm:$0xff] %v5955_v7 }
  0xdc   : > { %v5958_v8 = vpop.f32.mrf.mxu0  ;;  %v6091_v2 = vpop.f32.mrf.mxu1 }
  0xdd   : > { %7126 = vst [vmem:[#allocation4_spill] sm:$0xff] %v5958_v8 }
  0xde   : > { %v5960_v9 = vpop.f32.mrf.mxu0  ;;  %v6101_v48 = vpop.f32.mrf.mxu1 }
  0xdf   : > { %7127 = vst [vmem:[#allocation5_spill] sm:$0xff] %v5960_v9 }
  0xe0   : > { %v5962_v10 = vpop.f32.mrf.mxu0  ;;  %v6111_v3 = vpop.f32.mrf.mxu1 }
  0xe1   : > { %7128 = vst [vmem:[#allocation6_spill] sm:$0xff] %v5962_v10 }
  0xe2   : > { %v5964_v11 = vpop.f32.mrf.mxu0  ;;  %v6121_v46 = vpop.f32.mrf.mxu1 }
  0xe4   : > { %v5966_v12 = vpop.f32.mrf.mxu0  ;;  %v6131_v62 = vpop.f32.mrf.mxu1 }
  0xe6   : > { %v5968_v13 = vpop.f32.mrf.mxu0  ;;  %v6141_v55 = vpop.f32.mrf.mxu1 }
  0xe8   : > { %v5970_v14 = vpop.f32.mrf.mxu0  ;;  %v6151_v35 = vpop.f32.mrf.mxu1 }
  0xea   : > { %v5972_v15 = vpop.f32.mrf.mxu0 }
  0xec   : > { %v5974_v16 = vpop.f32.mrf.mxu0 }
  0xee   : > { %v5976_v17 = vpop.f32.mrf.mxu0 }
  0xf0   : > { %v5978_v18 = vpop.f32.mrf.mxu0 }
  0xf2   : > { %v5980_v19 = vpop.f32.mrf.mxu0 }
  0xf3   : > { %7129 = vst [vmem:[#allocation7_spill] sm:$0xff] %v5980_v19 }
  0xf4   : > { %v5989_v21 = vpop.f32.mrf.mxu0 }
  0xf6   : > { %v5993_v22 = vpop.f32.mrf.mxu0 }
  0xf7   : > { %7131 = vst [vmem:[#allocation9_spill] sm:$0xff] %v5993_v22  ;;  %v6161_v22 = vpop.f32.mrf.mxu1 }
  0xf8   : > { %v5995_v23 = vpop.f32.mrf.mxu0  ;;  %7146 = vst [vmem:[#allocation24_spill] sm:$0xff] %v6161_v22 }
  0xf9   : > { %7132 = vst [vmem:[#allocation10_spill] sm:$0xff] %v5995_v23 }
  0xfa   : > { %v5997_v24 = vpop.f32.mrf.mxu0 }
  0xfc   : > { %v5999_v25 = vpop.f32.mrf.mxu0 }
  0xfe   : > { %v6001_v26 = vpop.f32.mrf.mxu0 }
 0x100   : > { %v6003_v27 = vpop.f32.mrf.mxu0 }
 0x102   : > { %v6005_v28 = vpop.f32.mrf.mxu0 }
 0x104   : > { %v6007_v29 = vpop.f32.mrf.mxu0 }
 0x106   : > { %v6009_v30 = vpop.f32.mrf.mxu0 }
 0x108   : > { %v6011_v31 = vpop.f32.mrf.mxu0 }
 0x10a   : > { %v6013_v32 = vpop.f32.mrf.mxu0 }
 0x10c   : > { %v6015_v33 = vpop.f32.mrf.mxu0 }
 0x10e   : > { %v6017_v34 = vpop.f32.mrf.mxu0 }
 0x10f   : > { %7133 = vst [vmem:[#allocation11_spill] sm:$0xff] %v6017_v34 }
 0x110   : > { %v6024_v36 = vpop.f32.mrf.mxu0 }
 0x112   : > { %v6028_v37 = vpop.f32.mrf.mxu0 }
 0x113   : > { %7135 = vst [vmem:[#allocation13_spill] sm:$0xff] %v6028_v37 }
 0x114   : > { %v6030_v38 = vpop.f32.mrf.mxu0 }
 0x115   : > { %7136 = vst [vmem:[#allocation14_spill] sm:$0xff] %v6030_v38 }
 0x116   : > { %v6032_v39 = vpop.f32.mrf.mxu0 }
 0x117   : > { %7137 = vst [vmem:[#allocation15_spill] sm:$0xff] %v6032_v39 }
 0x118   : > { %v6034_v40 = vpop.f32.mrf.mxu0 }
 0x11a   : > { %v6036_v41 = vpop.f32.mrf.mxu0 }
 0x11b   : > { %7138 = vst [vmem:[#allocation16_spill] sm:$0xff] %v6036_v41 }
 0x11c   : > { %v6040_v43 = vpop.f32.mrf.mxu0 }
 0x11d   : > { %7139 = vst [vmem:[#allocation17_spill] sm:$0xff] %v6040_v43 }
 0x11e   : > { %v6044_v45 = vpop.f32.mrf.mxu0 }
 0x11f   : > { %7140 = vst [vmem:[#allocation18_spill] sm:$0xff] %v6044_v45 }
 0x120   : > { %v6048_v47 = vpop.f32.mrf.mxu0 }
 0x121   : > { %7141 = vst [vmem:[#allocation19_spill] sm:$0xff] %v6048_v47 }
 0x122   : > { %v6052_v49 = vpop.f32.mrf.mxu0 }
 0x124   : > { %v6056_v51 = vpop.f32.mrf.mxu0 }
 0x126   : > { %v6067_v54 = vpop.f32.mrf.mxu0 }
 0x128   : > { %v6071_v56 = vpop.f32.mrf.mxu0 }
 0x12a   : > { %v6075_v58 = vpop.f32.mrf.mxu0 }
 0x12c   : > { %v6079_v60 = vpop.f32.mrf.mxu0 }
 0x12e   : > { %v6085_v63 = vpop.f32.mrf.mxu0 }
 0x130   : > { %v6089_v1 = vpop.f32.mrf.mxu0 }
 0x132   : > { %v6095_v4 = vpop.f32.mrf.mxu0 }
 0x133   : > { %7143 = vst [vmem:[#allocation21_spill] sm:$0xff] %v6095_v4  ;;  %v6171_v4 = vpop.f32.mrf.mxu1 }
 0x134   : > { %v6099_v6 = vpop.f32.mrf.mxu0 }
 0x135   : > { %v6181_v23 = vpop.f32.mrf.mxu1 }
 0x136   : > { %v6105_v44 = vpop.f32.mrf.mxu0  ;;  %7150 = vst [vmem:[#allocation28_spill] sm:$0xff] %v6181_v23 }
 0x137   : > { %7144 = vst [vmem:[#allocation22_spill] sm:$0xff] %v6105_v44  ;;  %v6191_v43 = vpop.f32.mrf.mxu1 }
 0x138   : > { %v6109_v0 = vpop.f32.mrf.mxu0  ;;  %7153 = vst [vmem:[#allocation31_spill] sm:$0xff] %v6191_v43  ;;  %v7158_v43 = vmax.f32 %v5964_v11, %v6052_v49 }
 0x139   : > { %7145 = vst [vmem:[#allocation23_spill] sm:$0xff] %v6109_v0  ;;  %v5402_v23 = vpop.f32.mrf.mxu1 }
 0x13a   : > { %v6115_v5 = vpop.f32.mrf.mxu0 }
 0x13c   : > { %v6119_v57 = vpop.f32.mrf.mxu0 }
 0x13e   : > { %v6125_v42 = vpop.f32.mrf.mxu0 }
 0x140   : > { %v6129_v50 = vpop.f32.mrf.mxu0 }
 0x142   : > { %v6135_v59 = vpop.f32.mrf.mxu0 }
 0x144   : > { %v6139_v44 = vpop.f32.mrf.mxu0 }
 0x146   : > { %v6145_v53 = vpop.f32.mrf.mxu0 }
 0x148   : > { %v6149_v10 = vpop.f32.mrf.mxu0 }
 0x14a   : > { %v6155_v20 = vpop.f32.mrf.mxu0 }
 0x14c   : > { %v6159_v0 = vpop.f32.mrf.mxu0 }
 0x14e   : > { %v6165_v47 = vpop.f32.mrf.mxu0 }
 0x14f   : > { %7147 = vst [vmem:[#allocation25_spill] sm:$0xff] %v6165_v47  ;;  %v6210_v47 = vld [vmem:[%s7076_s2] ss:$0 sm:$0xff] }
 0x150   : > { %v6169_v9 = vpop.f32.mrf.mxu0 }
 0x152   : > { %v6175_v19 = vpop.f32.mrf.mxu0 }
 0x153   : > { %7148 = vst [vmem:[#allocation26_spill] sm:$0xff] %v6175_v19 }
 0x154   : > { %v6179_v22 = vpop.f32.mrf.mxu0 }
 0x155   : > { %7149 = vst [vmem:[#allocation27_spill] sm:$0xff] %v6179_v22  ;;  %v1423_v22 = vpop.f32.mrf.mxu1 }
 0x156   : > { %v6185_v45 = vpop.f32.mrf.mxu0 }
 0x157   : > { %7151 = vst [vmem:[#allocation29_spill] sm:$0xff] %v6185_v45  ;;  %v5403_v39 = vpop.f32.mrf.mxu1 }
 0x158   : > { %v6189_v7 = vpop.f32.mrf.mxu0 }
 0x159   : > { %7152 = vst [vmem:[#allocation30_spill] sm:$0xff] %v6189_v7 }
 0x15a   : > { %v6195_v8 = vpop.f32.mrf.mxu0 }
 0x15b   : > { %7154 = vst [vmem:[#allocation32_spill] sm:$0xff] %v6195_v8 }
 0x15c   : > { %v6197_v34 = vpop.f32.mrf.mxu0 }
 0x15d   : > { %7155 = vst [vmem:[#allocation33_spill] sm:$0xff] %v6197_v34 }
 0x15e   : > { %v6199_v19 = vpop.f32.mrf.mxu0 }
 0x15f   : > { %7156 = vst [vmem:[#allocation34_spill] sm:$0xff] %v6199_v19 }
 0x160   : > { %v6201_v52 = vpop.f32.mrf.mxu0 }
 0x161   : > { %7157 = vst [vmem:[#allocation35_spill] sm:$0xff] %v6201_v52  ;;  %v7159_v52 = vmax.f32 %v5966_v12, %v6056_v51  ;;  %v7161_v12 = vmax.f32 %v5970_v14, %v6071_v56  ;;  %v7163_v56 = vmax.f32 %v5974_v16, %v6079_v60 }
 0x162   : > { %v5358_v38 = vpop.f32.mrf.mxu0 }
 0x163   : > { %v1524_v41 = vmax.f32 %v5358_v38, %v6081_v61 }
 0x164   : > { %v1247_v45 = vpop.f32.mrf.mxu0 }
 0x165   : > { %v1556_v37 = vmax.f32 %v7158_v43, %v1524_v41  ;;  %v1522_v34 = vmax.f32 %v1247_v45, %v6091_v2  ;;  %v1426_v41 = vpop.f32.mrf.mxu1  ;;  %v7160_v43 = vmax.f32 %v5968_v13, %v6067_v54 }
 0x166   : > { %v5359_v19 = vpop.f32.mrf.mxu0 }
 0x167   : > { %v6216_v8 = vmax.f32 %v7159_v52, %v1522_v34  ;;  %v1525_v38 = vmax.f32 %v5359_v19, %v6101_v48  ;;  %v6220_v61 = vadd.f32 %v6210_v47, %v1556_v37  ;;  %v5406_v51 = vpop.f32.mrf.mxu1 }
 0x168   : > { %v1250_v11 = vpop.f32.mrf.mxu0 }
 0x169   : > { %v1557_v49 = vmax.f32 %v7160_v43, %v1525_v38  ;;  %v1523_v7 = vmax.f32 %v1250_v11, %v6111_v3  ;;  %v7116_v19 = vmax.f32 %v6220_v61, 0.0  ;;  %v7162_v3 = vmax.f32 %v5972_v15, %v6075_v58  ;;  %v1439_v58 = vpop.f32.mrf.mxu1 }
 0x16a   : > { %v5362_v45 = vpop.f32.mrf.mxu0 }
 0x16b   : > { %v6227_v2 = vadd.f32 %v6210_v47, %v1557_v49  ;;  %v1555_v34 = vmax.f32 %v7161_v12, %v1523_v7  ;;  %v1528_v37 = vmax.f32 %v5362_v45, %v6121_v46  ;;  %v7164_v45 = vmax.f32 %v5976_v17, %v6085_v63 }
 0x16c   : > { %v1263_v48 = vpop.f32.mrf.mxu0 }
 0x16d   : > { %v7115_v52 = vmax.f32 %v6227_v2, 0.0  ;;  %v6236_v13 = vadd.f32 %v6210_v47, %v1555_v34  ;;  %v1526_v54 = vmax.f32 %v1263_v48, %v6131_v62  ;;  %v6242_v38 = vmax.f32 %v7162_v3, %v1528_v37 }
 0x16e   : > { %v5363_v14 = vpop.f32.mrf.mxu0  ;;  %v1972_v62 = vrot.slane %v7116_v19, 7 }
 0x16f   : > { %v1974_v7 = vrot.slane %v7115_v52, 7  ;;  %v7117_v46 = vmax.f32 %v6236_v13, 0.0  ;;  %v6250_v11 = vmax.f32 %v7163_v56, %v1526_v54  ;;  %v1529_v43 = vmax.f32 %v5363_v14, %v6141_v55  ;;  %v5407_v54 = vpop.f32.mrf.mxu1 }
 0x170   : > { %v1266_v15 = vpop.f32.mrf.mxu0  ;;  %v7165_v55 = vmax.f32 %v5978_v18, %v6089_v1 }
 0x171   : > { %v1971_v49 = vrot.slane %v7117_v46, 7  ;;  %v6260_v12 = vmax.f32 %v7164_v45, %v1529_v43  ;;  %v1527_v34 = vmax.f32 %v1266_v15, %v6151_v35  ;;  %v6266_v60 = vsel %vm1970_vm4, %v1972_v62, %v1974_v7  ;;  %v1442_v56 = vpop.f32.mrf.mxu1 }
 0x172   : > { %v6263_v16 = vpop.f32.mrf.mxu0  ;;  %v7166_v35 = vmax.f32 %v5989_v21, %v6099_v6  ;;  %v7168_v21 = vmax.f32 %v5999_v25, %v6119_v57  ;;  %v7170_v25 = vmax.f32 %v6003_v27, %v6129_v50  ;;  %v7172_v27 = vmax.f32 %v6007_v29, %v6139_v44 }
 0x173   : > { %v6271_v37 = vmax.f32 %v7165_v55, %v1527_v34  ;;  %v6274_v3 = vsel %vm1970_vm4, %v1971_v49, %v1972_v62  ;;  %v6287_v45 = vpop.f32.mrf.mxu1  ;;  %v7174_v29 = vmax.f32 %v6011_v31, %v6149_v10  ;;  %v7176_v10 = vmax.f32 %v6015_v33, %v6159_v0 }
 0x174   : > { %v1279_v48 = vpop.f32.mrf.mxu0 }
 0x175   : > { %v1530_v17 = vmax.f32 %v1279_v48, %v6171_v4  ;;  %v7167_v4 = vmax.f32 %v5997_v24, %v6115_v5 }
 0x176   : > { %v6277_v63 = vpop.f32.mrf.mxu0 }
 0x177   : > { %v1562_v14 = vmax.f32 %v7166_v35, %v1530_v17  ;;  %v1455_v35 = vpop.f32.mrf.mxu1 }
 0x178   : > { %v6282_v7 = vpop.f32.mrf.mxu0 }
 0x179   : > { %v6285_v18 = vadd.f32 %v6210_v47, %v1562_v14 }
 0x17a   : > { %v5370_v1 = vpop.f32.mrf.mxu0 }
 0x17b   : > { %v1536_v43 = vmax.f32 %v5370_v1, %v5402_v23  ;;  %v1653_v1 = vlaneseq }
 0x17c   : > { %v1295_v15 = vpop.f32.mrf.mxu0 }
 0x17d   : > { %v1534_v62 = vmax.f32 %v1295_v15, %v1423_v22  ;;  %v1568_v49 = vmax.f32 %v7167_v4, %v1536_v43  ;;  %v7169_v22 = vmax.f32 %v6001_v26, %v6125_v42  ;;  %v7171_v26 = vmax.f32 %v6005_v28, %v6135_v59 }
 0x17e   : > { %v5371_v34 = vpop.f32.mrf.mxu0  ;;  %v7173_v28 = vmax.f32 %v6009_v30, %v6145_v53 }
 0x17f   : > { %v1566_v6 = vmax.f32 %v7168_v21, %v1534_v62  ;;  %v1537_v55 = vmax.f32 %v5371_v34, %v5403_v39  ;;  %v6296_v48 = vadd.f32 %v6210_v47, %v1568_v49  ;;  %v6310_v62 = vpop.f32.mrf.mxu1  ;;  %v6318_v34 = vshrl.u32 %v1653_v1, 7 }
 0x180   : > { %v1298_v17 = vpop.f32.mrf.mxu0 }
 0x181   : > { %v6299_v23 = vadd.f32 %v6210_v47, %v1566_v6  ;;  %v1569_v14 = vmax.f32 %v7169_v22, %v1537_v55  ;;  %v1535_v24 = vmax.f32 %v1298_v17, %v1426_v41  ;;  %v1458_v55 = vpop.f32.mrf.mxu1  ;;  %vm1965_vm6 = vcmp.ge.s32.totalorder %v6318_v34, 1 }
 0x182   : > { %v5374_v5 = vpop.f32.mrf.mxu0  ;;  %vm1678_vm8 = vcmp.ge.s32.totalorder %v6318_v34, 4  ;;  %vm1656_vm11 = vcmp.ge.s32.totalorder %v6318_v34, 5 }
 0x183   : > { %v6305_v43 = vadd.f32 %v6210_v47, %v1569_v14  ;;  %v1567_v39 = vmax.f32 %v7170_v25, %v1535_v24  ;;  %v1540_v57 = vmax.f32 %v5374_v5, %v5406_v51  ;;  %v1655_v14 = vadd.s32 8, %v6318_v34  ;;  %v5414_v1 = vpop.f32.mrf.mxu1 }
 0x184   : > { %v1311_v15 = vpop.f32.mrf.mxu0 }
 0x185   : > { %v6313_v4 = vadd.f32 %v6210_v47, %v1567_v39  ;;  %v1572_v42 = vmax.f32 %v7171_v26, %v1540_v57  ;;  %v1538_v41 = vmax.f32 %v1311_v15, %v1439_v58 }
 0x186   : > { %v5375_v49 = vpop.f32.mrf.mxu0 }
 0x187   : > { %v6321_v21 = vadd.f32 %v6210_v47, %v1572_v42  ;;  %v1570_v50 = vmax.f32 %v7172_v27, %v1538_v41  ;;  %v1541_v51 = vmax.f32 %v5375_v49, %v5407_v54  ;;  %v6350_v42 = vpop.f32.mrf.mxu1 }
 0x188   : > { %v1314_v6 = vpop.f32.mrf.mxu0 }
 0x189   : > { %v6327_v17 = vadd.f32 %v6210_v47, %v1570_v50  ;;  %v1573_v59 = vmax.f32 %v7173_v28, %v1541_v51  ;;  %v1539_v58 = vmax.f32 %v1314_v6, %v1442_v56  ;;  %v7111_v54 = vmax.f32 %v6321_v21, 0.0 }
 0x18a   : > { %v5378_v22 = vpop.f32.mrf.mxu0  ;;  %v1671_v56 = vand.u32 3, %v1655_v14  ;;  %v7179_v28 = vmax.f32 %v6024_v36, %v6169_v9 }
 0x18b   : > { %v1612_v24 = vadd.f32 %v6210_v47, %v1573_v59  ;;  %v1571_v44 = vmax.f32 %v7174_v29, %v1539_v58  ;;  %v3498_v26 = vrot.slane %v7111_v54, 7  ;;  %v7180_v29 = vmax.f32 %v6013_v32, %v6155_v20 }
 0x18c   : > { %v1327_v5 = vpop.f32.mrf.mxu0  ;;  %vm6358_vm5 = vcmp.ne.s32.totalorder %v1671_v56, 0 }
 0x18d   : > { %v6338_v25 = vmax.f32 %v1612_v24, 0.0  ;;  %v6341_v39 = vadd.f32 %v6210_v47, %v1571_v44  ;;  %v1542_v30 = vmax.f32 %v1327_v5, %v1455_v35  ;;  %v1544_v35 = vmax.f32 %v5378_v22, %v6287_v45  ;;  %v5415_v22 = vpop.f32.mrf.mxu1  ;;  %v7214_v24 = vld [vmem:[#allocation7_spill] sm:$0xff] }
 0x18e   : > { %v5379_v53 = vpop.f32.mrf.mxu0  ;;  %v1670_v45 = vand.u32 3, %v6318_v34 }
 0x18f   : > { %7175 = vst [vmem:[#allocation36_spill] sm:$0xff] %v6338_v25  ;;  %v3500_v57 = vrot.slane %v6338_v25, 7  ;;  %v7112_v15 = vmax.f32 %v6341_v39, 0.0  ;;  %v1574_v31 = vmax.f32 %v7176_v10, %v1542_v30  ;;  %v1576_v44 = vmax.f32 %v7180_v29, %v1544_v35  ;;  %v7182_v30 = vld [vmem:[#allocation26_spill] sm:$0xff]  ;;  %v7190_v29 = vld [vmem:[#allocation25_spill] sm:$0xff] }
 0x190   : > { %v1330_v41 = vpop.f32.mrf.mxu0  ;;  %v1545_v5 = vmax.f32 %v5379_v53, %v6310_v62  ;;  %vm6396_vm9 = vcmp.ne.s32.totalorder %v1670_v45, 0  ;;  %v1474_v62 = vpop.f32.mrf.mxu1  ;;  %v7215_v35 = vld [vmem:[#allocation21_spill] sm:$0xff] }
 0x191   : > { %v3497_v49 = vrot.slane %v7112_v15, 7  ;;  %v6356_v27 = vadd.f32 %v6210_v47, %v1574_v31  ;;  %v1543_v50 = vmax.f32 %v1330_v41, %v1458_v55  ;;  %v6363_v33 = vsel %vm1970_vm4, %v3498_v26, %v3500_v57  ;;  %v7192_v15 = vld [vmem:[#allocation30_spill] sm:$0xff] }
 0x192   : > { %v5382_v51 = vpop.f32.mrf.mxu0  ;;  %v1684_v31 = vrot.slane %v6338_v25, 4  ;;  %v7216_v52 = vmax.f32 %v7214_v24, %v7215_v35  ;;  %v7243_v41 = vmax.f32 %v6321_v21, 0.0 }
 0x193   : > { %v7114_v0 = vmax.f32 %v6356_v27, 0.0  ;;  %v1575_v59 = vmax.f32 %v7179_v28, %v1543_v50  ;;  %v1548_v58 = vmax.f32 %v5382_v51, %v5414_v1  ;;  %v3499_v55 = vsel %vm1970_vm4, %v3497_v49, %v3498_v26  ;;  %v7181_v1 = vld [vmem:[#allocation13_spill] sm:$0xff]  ;;  %v7186_v51 = vld [vmem:[#allocation15_spill] sm:$0xff] }
 0x194   : > { %v6370_v14 = vpop.f32.mrf.mxu0  ;;  %v7183_v56 = vmax.f32 %v7181_v1, %v7182_v30  ;;  %v6392_v20 = vsel %vm1965_vm6, %v3499_v55, 0.0  ;;  %v7187_v28 = vld [vmem:[#allocation29_spill] sm:$0xff]  ;;  %v7189_v55 = vld [vmem:[#allocation11_spill] sm:$0xff] }
 0x195   : > { %v1685_v9 = vrot.slane %v7114_v0, 4  ;;  %v6383_v36 = vadd.f32 %v6210_v47, %v1575_v59  ;;  %v7188_v59 = vmax.f32 %v7186_v51, %v7187_v28  ;;  %v7191_v1 = vmax.f32 %v7189_v55, %v7190_v29  ;;  %v7200_v55 = vld [vmem:[#allocation24_spill] sm:$0xff]  ;;  %v7201_v29 = vld [vmem:[#allocation31_spill] sm:$0xff] }
 0x196   : > { %v1580_v57 = vmax.f32 %v7183_v56, %v1548_v58  ;;  %v5383_v10 = vpop.f32.mrf.mxu0 }
 0x197   : > { %v7113_v32 = vmax.f32 %v6383_v36, 0.0  ;;  %v1549_v26 = vmax.f32 %v5383_v10, %v5415_v22  ;;  %v1686_v49 = vsel %vm1683_vm7, %v1684_v31, %v1685_v9  ;;  %v1615_v22 = vadd.f32 %v6210_v47, %v1576_v44 }
 0x198   : > { %v1346_v53 = vpop.f32.mrf.mxu0  ;;  %v1577_v30 = vmax.f32 %v7191_v1, %v1545_v5  ;;  %v1619_v56 = vadd.f32 %v6210_v47, %v1580_v57  ;;  %v1691_v10 = vsel %vm1678_vm8, %v1686_v49, 0.0  ;;  %v6426_v5 = vld [vmem:[%s7077_s3] sm:$0xff]  ;;  %v1531_v1 = vmax.f32 %v6282_v7, %v7201_v29 }
 0x199   : > { %v1687_v50 = vrot.slane %v7113_v32, 4  ;;  %v1581_v58 = vmax.f32 %v7188_v59, %v1549_v26  ;;  %v1547_v45 = vmax.f32 %v1346_v53, %v1474_v62  ;;  %v7193_v32 = vmax.f32 %v6034_v40, %v7192_v15  ;;  %5420 = vmatprep.mubr.msk.f32.mxu1 %vm1696_vm10, %v1691_v10  ;;  %v7194_v26 = vld [vmem:[#allocation32_spill] sm:$0xff]  ;;  %v7195_v40 = vld [vmem:[#allocation3_spill] sm:$0xff]  ;;  %v7198_v59 = vld [vmem:[#allocation33_spill] sm:$0xff] }
 0x19a   : > { %v5386_v31 = vpop.f32.mrf.mxu0  ;;  %v7196_v15 = vld [vmem:[#allocation16_spill] sm:$0xff]  ;;  %v6449_v10 = vmax.f32 %v1615_v22, 0.0  ;;  %v7241_v6 = vmax.f32 %v6383_v36, 0.0 }
 0x19b   : > { %v1620_v54 = vadd.f32 %v6210_v47, %v1581_v58  ;;  %v1579_v51 = vmax.f32 %v7193_v32, %v1547_v45  ;;  %v1520_v44 = vmax.f32 %v7194_v26, %v5386_v31  ;;  %v1688_v62 = vsel %vm1683_vm7, %v1685_v9, %v1687_v50  ;;  %v7199_v9 = vld [vmem:[#allocation20_spill] sm:$0xff] }
 0x19c   : > { %v1359_v57 = vpop.f32.mrf.mxu0  ;;  %5421 = vmatmul.mubr.msk.f32.vlgmr.msra.gmra.mxu1 %vm1696_vm10, %v1688_v62  ;;  %v7197_v32 = vmax.f32 %v7195_v40, %v7196_v15  ;;  %v6443_v45 = vld [vmem:[%s7077_s3 + $0x28] sm:$0x3]  ;;  %v6451_v31 = vmax.f32 %v1619_v56, 0.0  ;;  %v1616_v26 = vadd.f32 %v6210_v47, %v1577_v30  ;;  %v7207_v56 = vld [vmem:[#allocation5_spill] sm:$0xff]  ;;  %v1868_v19 = vrot.slane %v6449_v10, 4 }
 0x19d   : > { %v6429_v53 = vmax.f32 %v1620_v54, 0.0  ;;  %v1618_v49 = vadd.f32 %v6210_v47, %v1579_v51  ;;  %v1518_v58 = vmax.f32 %v7198_v59, %v1359_v57  ;;  %5424 = vmatpush3.msk.msra.mxu1 %vm1703_vm3, %v7199_v9  ;;  %v1532_v54 = vmax.f32 %v6263_v16, %v7200_v55  ;;  %v7203_v62 = vld [vmem:[#allocation4_spill] sm:$0xff]  ;;  %v7204_v57 = vld [vmem:[#allocation17_spill] sm:$0xff]  ;;  %v7208_v59 = vld [vmem:[#allocation18_spill] sm:$0xff] }
 0x19e   : > { %v6435_v28 = vmax.f32 %v7197_v32, %v1520_v44  ;;  %v5387_v51 = vpop.f32.mrf.mxu0  ;;  %5425 = vmatprep.subr.mxu1 %v6426_v5  ;;  %v7205_v40 = vmax.f32 %v7203_v62, %v7204_v57  ;;  %v7206_v32 = vld [vmem:[#allocation34_spill] sm:$0xff]  ;;  %v7209_v55 = vmax.f32 %v7207_v56, %v7208_v59  ;;  %v7212_v62 = vld [vmem:[#allocation23_spill] sm:$0xff]  ;;  %v3758_v46 = vrot.slane %v6451_v31, 7  ;;  %v5752_v36 = vld [vmem:[%s7077_s3 + $0x10] sm:$0xff] }
 0x19f   : > { %v6455_v44 = vmax.f32 %v1618_v49, 0.0  ;;  %v1521_v16 = vmax.f32 %v7206_v32, %v5387_v51  ;;  %5426 = vmatpush3.msra.mxu1 %v6426_v5  ;;  %v1664_v22 = vrot.slane %v6429_v53, 3  ;;  %v7210_v49 = vld [vmem:[#allocation35_spill] sm:$0xff]  ;;  %v1662_v32 = vrot.slane %v6451_v31, 3  ;;  %v7217_v59 = vld [vmem:[#allocation6_spill] sm:$0xff] }
 0x1a0   : > { %v1550_v15 = vmax.f32 %v7205_v40, %v1518_v58  ;;  %v1362_v7 = vpop.f32.mrf.mxu0  ;;  %5430 = vmatprep.subr.msk.mxu1 %vm1703_vm3, %v6443_v45  ;;  %v7211_v58 = vld [vmem:[#allocation10_spill] sm:$0xff]  ;;  %v3760_v0 = vrot.slane %v6429_v53, 7  ;;  %v1564_v56 = vmax.f32 %v7216_v52, %v1532_v54  ;;  %v1869_v52 = vsel %vm1683_vm7, %v1687_v50, %v1868_v19 }
 0x1a1   : > { %7202 = vst [vmem:[#allocation13_spill] sm:$0xff] %v6455_v44  ;;  %v6468_v30 = vmax.f32 %v7209_v55, %v1521_v16  ;;  %v1519_v29 = vmax.f32 %v7210_v49, %v1362_v7  ;;  %v7213_v51 = vmax.f32 %v7211_v58, %v7212_v62  ;;  %v1661_v40 = vrot.slane %v6455_v44, 3  ;;  %v7218_v7 = vld [vmem:[#allocation19_spill] sm:$0xff]  ;;  %v7220_v58 = vld [vmem:[#allocation28_spill] sm:$0xff] }
 0x1a2   : > { %v6481_v16 = vmax.f32 %v1616_v26, 0.0  ;;  %v7219_v55 = vmax.f32 %v7217_v59, %v7218_v7  ;;  %v3757_v54 = vrot.slane %v6455_v44, 7  ;;  %v6498_v26 = vsel %vm1970_vm4, %v3758_v46, %v3760_v0  ;;  %v6507_v50 = vld [vmem:[%s7077_s3 + $0x20] sm:$0xff]  ;;  %v7221_v0 = vld [vmem:[#allocation9_spill] sm:$0xff] }
 0x1a3   : > { %v1563_v57 = vmax.f32 %v7213_v51, %v1531_v1  ;;  %v1533_v1 = vmax.f32 %v6277_v63, %v7220_v58  ;;  %v1663_v62 = vsel %vm934_vm0, %v1661_v40, %v1662_v32  ;;  %v1665_v51 = vsel %vm934_vm0, %v1662_v32, %v1664_v22 }
 0x1a4   : > { %v1551_v49 = vmax.f32 %v7219_v55, %v1519_v29  ;;  %v1668_v25 = vsel %vm1656_vm11, %v1663_v62, 0.0  ;;  %v1870_v63 = vrot.slane %v6481_v16, 4  ;;  %v1675_v22 = vsel %vm6358_vm5, %v1665_v51, 0.0  ;;  %v6554_v51 = vld [vmem:[%s7077_s3 + $0x30] sm:$0xff] }
 0x1a5   : > { %v1602_v24 = vadd.f32 %v6210_v47, %v1563_v57  ;;  %v1674_v35 = vsel %vm6396_vm9, %v1668_v25, 0.0  ;;  %v1603_v29 = vadd.f32 %v6210_v47, %v1564_v56  ;;  %v7222_v57 = vld [vmem:[#allocation22_spill] sm:$0xff]  ;;  %v6519_v59 = vsel %vm1678_vm8, %v1869_v52, 0.0  ;;  %v6688_v25 = vld [vmem:[%s7077_s3 + $0x70] sm:$0xff] }
 0x1a6   : > { %5427 = vmatprep.mubr.msk.f32.mxu1 %vm1696_vm10, %v1674_v35  ;;  %v7223_v40 = vmax.f32 %v7221_v0, %v7222_v57  ;;  %v3759_v7 = vsel %vm1970_vm4, %v3757_v54, %v3758_v46  ;;  %v6529_v56 = vld [vmem:[%s7077_s3 + $0x38] sm:$0x3]  ;;  %v1978_v55 = vsel %vm1965_vm6, %v6274_v3, 0.0  ;;  %v1589_v62 = vadd.f32 %v6210_v47, %v1550_v15  ;;  %v6573_v35 = vld [vmem:[%s7077_s3 + $0x48] sm:$0x3]  ;;  %v6589_v0 = vld [vmem:[%s7077_s3 + $0x40] sm:$0xff] }
 0x1a7   : > { %5428 = vmatmul.mubr.msk.f32.vlgmr.msra.gmra.mxu1 %vm1696_vm10, %v1675_v22  ;;  %v6536_v58 = vsel %vm1965_vm6, %v3759_v7, 0.0  ;;  %v6538_v46 = vmax.f32 %v1602_v24, 0.0  ;;  %v6549_v3 = vsel %vm1683_vm7, %v1868_v19, %v1870_v63  ;;  %v6556_v52 = vmax.f32 %v1603_v29, 0.0 }
 0x1a8   : > { %v1565_v32 = vmax.f32 %v7223_v40, %v1533_v1  ;;  %5431 = vmatpush3.msk.msra.mxu1 %vm1703_vm3, %v6443_v45  ;;  %5434 = vmatprep.mubr.msk.f32.mxu1 %vm1696_vm10, %v6519_v59  ;;  %v1980_v15 = vsel %vm6396_vm9, %v1978_v55, 0.0  ;;  %v1546_v19 = vmax.f32 %v6370_v14, %v6350_v42  ;;  %v1590_v22 = vadd.f32 %v6210_v47, %v1551_v49  ;;  %v7225_v40 = vld [vmem:[#allocation27_spill] sm:$0xff] }
 0x1a9   : > { %5432 = vmatprep.subr.mxu1 %v6507_v50  ;;  %v2252_v54 = vrot.slane %v6538_v46, 7  ;;  %v6580_v29 = vadd.f32 %v6210_v47, %v6435_v28  ;;  %v1621_v42 = vmax.f32 %v1589_v62, 0.0  ;;  %v1981_v14 = vsel %vm6358_vm5, %v6266_v60, 0.0  ;;  %v7224_v28 = vld [vmem:[#allocation14_spill] sm:$0xff] }
 0x1aa   : > { %5433 = vmatpush3.msra.mxu1 %v6507_v50  ;;  %v1604_v24 = vadd.f32 %v6210_v47, %v1565_v32  ;;  %v2253_v49 = vrot.slane %v6556_v52, 7  ;;  %v7226_v32 = vmax.f32 %v7224_v28, %v7225_v40  ;;  %v6606_v60 = vld [vmem:[%s7077_s3 + $0x58] sm:$0x3]  ;;  %v6610_v55 = vadd.f32 %v6210_v47, %v6468_v30  ;;  %v6650_v40 = vld [vmem:[%s7077_s3 + $0x60] sm:$0xff] }
 0x1ab   : > { %5437 = vmatprep.subr.msk.mxu1 %vm1703_vm3, %v6529_v56  ;;  %5435 = vmatmul.mubr.msk.f32.vlgmr.msra.gmra.mxu1 %vm1696_vm10, %v6549_v3  ;;  %v1622_v62 = vmax.f32 %v1590_v22, 0.0  ;;  %v6644_v28 = vadd.f32 %v6210_v47, %v6250_v11  ;;  %v7229_v34 = vmax.f32 %v6580_v29, 0.0 }
 0x1ac   : > { %5438 = vmatpush3.msk.msra.mxu1 %vm1703_vm3, %v6529_v56  ;;  %5441 = vmatprep.mubr.msk.f32.mxu1 %vm1696_vm10, %v1980_v15  ;;  %v6592_v57 = vmax.f32 %v1604_v24, 0.0  ;;  %v1578_v7 = vmax.f32 %v7226_v32, %v1546_v19  ;;  %v2254_v24 = vsel %vm1970_vm4, %v2252_v54, %v2253_v49  ;;  %v7122_v15 = vmax.f32 %v6580_v29, 0.0  ;;  %v6619_v19 = vld [vmem:[%s7077_s3 + $0x50] sm:$0xff]  ;;  %v6636_v54 = vld [vmem:[%s7077_s3 + $0x68] sm:$0x3] }
 0x1ad   : > { %5439 = vmatprep.subr.mxu1 %v6554_v51  ;;  %v2259_v22 = vsel %vm1965_vm6, %v2254_v24, 0.0  ;;  %v6674_v24 = vadd.f32 %v6210_v47, %v6271_v37  ;;  %v6704_v37 = vld [vmem:[%s7077_s3 + $0x88] sm:$0x3]  ;;  %v7233_v29 = vmax.f32 %v6227_v2, 0.0  ;;  %v7234_v2 = vmax.f32 %v6644_v28, 0.0 }
 0x1ae   : > { %5440 = vmatpush3.msra.mxu1 %v6554_v51  ;;  %v6626_v30 = vadd.f32 %v6210_v47, %v1578_v7  ;;  %v6659_v32 = vsel %vm6396_vm9, %v2259_v22, 0.0 }
 0x1af   : > { %5444 = vmatprep.subr.msk.mxu1 %vm1703_vm3, %v6573_v35  ;;  %5442 = vmatmul.mubr.msk.f32.vlgmr.msra.gmra.mxu1 %vm1696_vm10, %v1981_v14  ;;  %v7121_v14 = vmax.f32 %v6610_v55, 0.0  ;;  %v7123_v1 = vmax.f32 %v6674_v24, 0.0 }
 0x1b0   : > { %5445 = vmatpush3.msk.msra.mxu1 %vm1703_vm3, %v6573_v35  ;;  %5448 = vmatprep.mubr.msk.f32.mxu1 %vm1696_vm10, %v1621_v42  ;;  %v2255_v42 = vrot.slane %v6592_v57, 7  ;;  %v7119_v7 = vmax.f32 %v6626_v30, 0.0  ;;  %v7245_v21 = vmax.f32 %v6626_v30, 0.0 }
 0x1b1   : > { %5446 = vmatprep.subr.mxu1 %v6589_v0 }
 0x1b2   : > { %5447 = vmatpush3.msra.mxu1 %v6589_v0  ;;  %v2256_v11 = vsel %vm1970_vm4, %v2253_v49, %v2255_v42  ;;  %v1599_v49 = vadd.f32 %v6210_v47, %v6242_v38  ;;  %v7120_v42 = vmax.f32 %v6644_v28, 0.0  ;;  %v2531_v38 = vrot.slane %v7119_v7, 4 }
 0x1b3   : > { %5451 = vmatprep.subr.msk.mxu1 %vm1703_vm3, %v6606_v60  ;;  %5449 = vmatmul.mubr.msk.f32.vlgmr.msra.gmra.mxu1 %vm1696_vm10, %v1622_v62  ;;  %v6670_v62 = vld [vmem:[%s7077_s3 + $0x78] sm:$0x3]  ;;  %v6683_v22 = vsel %vm6358_vm5, %v2256_v11, 0.0  ;;  %v1600_v11 = vadd.f32 %v6210_v47, %v6260_v12  ;;  %v7237_v28 = vsel %vm6358_vm5, %v6363_v33, 0.0  ;;  %v1640_v33 = vmax.f32 %v6305_v43, 0.0 }
 0x1b4   : > { %5452 = vmatpush3.msk.msra.mxu1 %vm1703_vm3, %v6606_v60  ;;  %5455 = vmatprep.mubr.msk.f32.mxu1 %vm1696_vm10, %v7122_v15  ;;  %v6710_v7 = vmax.f32 %v1599_v49, 0.0  ;;  %v2532_v12 = vsel %vm1683_vm7, %v1870_v63, %v2531_v38  ;;  %v7227_v15 = vld [vmem:[#allocation8_spill] sm:$0xff]  ;;  %v7239_v43 = vsel %vm6358_vm5, %v6498_v26, 0.0 }
 0x1b5   : > { %5453 = vmatprep.subr.mxu1 %v6619_v19  ;;  %v6730_v49 = vmax.f32 %v1600_v11, 0.0  ;;  %v7228_v63 = vld [vmem:[#allocation12_spill] sm:$0xff] }
 0x1b6   : > { %5454 = vmatpush3.msra.mxu1 %v6619_v19 }
 0x1b7   : > { %5458 = vmatprep.subr.msk.mxu1 %vm1703_vm3, %v6636_v54  ;;  %5456 = vmatmul.mubr.msk.f32.vlgmr.msra.gmra.mxu1 %vm1696_vm10, %v7121_v14  ;;  %v2533_v14 = vrot.slane %v6455_v44, 4  ;;  %v2695_v44 = vrot.slane %v6451_v31, 4 }
 0x1b8   : > { %5459 = vmatpush3.msk.msra.mxu1 %vm1703_vm3, %v6636_v54  ;;  %5462 = vmatprep.mubr.msk.f32.mxu1 %vm1696_vm10, %v6659_v32 }
 0x1b9   : > { %5460 = vmatprep.subr.mxu1 %v6650_v40  ;;  %v2534_v11 = vsel %vm1683_vm7, %v2531_v38, %v2533_v14  ;;  %v2697_v38 = vrot.slane %v6429_v53, 4 }
 0x1ba   : > { %5461 = vmatpush3.msra.mxu1 %v6650_v40 }
 0x1bb   : > { %5465 = vmatprep.subr.msk.mxu1 %vm1703_vm3, %v6670_v62  ;;  %5463 = vmatmul.mubr.msk.f32.vlgmr.msra.gmra.mxu1 %vm1696_vm10, %v6683_v22 }
 0x1bc   : > { %5466 = vmatpush3.msk.msra.mxu1 %vm1703_vm3, %v6670_v62  ;;  %5469 = vmatprep.mubr.msk.f32.mxu1 %vm1696_vm10, %v7120_v42  ;;  %v6716_v42 = vld [vmem:[%s7077_s3 + $0x80] sm:$0xff] }
 0x1bd   : > { %5467 = vmatprep.subr.mxu1 %v6688_v25 }
 0x1be   : > { %5468 = vmatpush3.msra.mxu1 %v6688_v25 }
 0x1bf   : > { %5472 = vmatprep.subr.msk.mxu1 %vm1703_vm3, %v6704_v37  ;;  %5470 = vmatmul.mubr.msk.f32.vlgmr.msra.gmra.mxu1 %vm1696_vm10, %v7123_v1  ;;  %v2537_v1 = vsel %vm1678_vm8, %v2532_v12, 0.0 }
 0x1c0   : > { %5473 = vmatpush3.msk.msra.mxu1 %vm1703_vm3, %v6704_v37  ;;  %5476 = vmatprep.mubr.msk.f32.mxu1 %vm1696_vm10, %v6710_v7 }
 0x1c1   : > { %5474 = vmatprep.subr.mxu1 %v6716_v42 }
 0x1c2   : > { %5475 = vmatpush3.msra.mxu1 %v6716_v42 }
 0x1c3   : > { %5479 = vmatprep.subr.msk.mxu1 %vm1703_vm3, %v7227_v15  ;;  %5477 = vmatmul.mubr.msk.f32.vlgmr.msra.gmra.mxu1 %vm1696_vm10, %v6730_v49 }
 0x1c4   : > { %5480 = vmatpush3.msk.msra.mxu1 %vm1703_vm3, %v7227_v15  ;;  %5483 = vmatprep.mubr.msk.f32.mxu1 %vm1696_vm10, %v2537_v1  ;;  %v2696_v1 = vsel %vm1683_vm7, %v2533_v14, %v2695_v44  ;;  %v2698_v14 = vsel %vm1683_vm7, %v2695_v44, %v2697_v38  ;;  %v7232_v44 = vmax.f32 %v6220_v61, 0.0  ;;  %v1633_v61 = vmax.f32 %v6285_v18, 0.0 }
 0x1c5   : > { %5481 = vmatprep.subr.mxu1 %v7228_v63  ;;  %v2701_v12 = vsel %vm1678_vm8, %v2696_v1, 0.0  ;;  %v1641_v18 = vmax.f32 %v6327_v17, 0.0  ;;  %v7242_v17 = vmax.f32 %v6341_v39, 0.0  ;;  %v7246_v39 = vld [vmem:[#allocation13_spill] sm:$0xff] }
 0x1c6   : > { %5482 = vmatpush3.msra.mxu1 %v7228_v63 }
 0x1c7   : > { %5486 = vmatprep.subr.msk.mxu1 %vm1703_vm3, %v7199_v9  ;;  %5484 = vmatmul.mubr.msk.f32.vlgmr.msra.gmra.mxu1 %vm1696_vm10, %v2534_v11 }
 0x1c8   : > { %5487 = vmatpush3.msk.msra.mxu1 %vm1703_vm3, %v7199_v9  ;;  %5490 = vmatprep.mubr.msk.f32.mxu1 %vm1696_vm10, %v6519_v59  ;;  %v1593_v59 = vadd.f32 %v6210_v47, %v6216_v8  ;;  %v7230_v8 = vmax.f32 %v6610_v55, 0.0  ;;  %v7231_v47 = vmax.f32 %v6236_v13, 0.0  ;;  %v7235_v13 = vmax.f32 %v6674_v24, 0.0 }
 0x1c9   : > { %5488 = vmatprep.subr.mxu1 %v6426_v5  ;;  %v7236_v55 = vsel %vm6396_vm9, %v6392_v20, 0.0  ;;  %v1638_v20 = vmax.f32 %v6313_v4, 0.0  ;;  %v7240_v4 = vmax.f32 %v6356_v27, 0.0  ;;  %v5751_v27 = vld [vmem:[%s7077_s3 + $0x18] sm:$0x3] }
 0x1ca   : > { %5489 = vmatpush3.msra.mxu1 %v6426_v5 }
 0x1cb   : > { %5493 = vmatprep.subr.msk.mxu1 %vm1703_vm3, %v6443_v45  ;;  %5491 = vmatmul.mubr.msk.f32.vlgmr.msra.gmra.mxu1 %vm1696_vm10, %v6549_v3  ;;  %v1625_v3 = vmax.f32 %v1593_v59, 0.0 }
 0x1cc   : > { %5494 = vmatpush3.msk.msra.mxu1 %vm1703_vm3, %v6443_v45  ;;  %5497 = vmatprep.mubr.msk.f32.mxu1 %vm1696_vm10, %v2701_v12 }
 0x1cd   : > { %5495 = vmatprep.subr.mxu1 %v6507_v50 }
 0x1ce   : > { %5496 = vmatpush3.msra.mxu1 %v6507_v50 }
 0x1cf   : > { %5500 = vmatprep.subr.msk.mxu1 %vm1703_vm3, %v6529_v56  ;;  %5498 = vmatmul.mubr.msk.f32.vlgmr.msra.gmra.mxu1 %vm1696_vm10, %v2698_v14 }
 0x1d0   : > { %5501 = vmatpush3.msk.msra.mxu1 %vm1703_vm3, %v6529_v56  ;;  %5504 = vmatprep.mubr.msk.f32.mxu1 %vm1696_vm10, %v7229_v34 }
 0x1d1   : > { %5502 = vmatprep.subr.mxu1 %v6554_v51 }
 0x1d2   : > { %5503 = vmatpush3.msra.mxu1 %v6554_v51 }
 0x1d3   : > { %5507 = vmatprep.subr.msk.mxu1 %vm1703_vm3, %v6573_v35  ;;  %5505 = vmatmul.mubr.msk.f32.vlgmr.msra.gmra.mxu1 %vm1696_vm10, %v7230_v8 }
 0x1d4   : > { %5508 = vmatpush3.msk.msra.mxu1 %vm1703_vm3, %v6573_v35  ;;  %5511 = vmatprep.mubr.msk.f32.mxu1 %vm1696_vm10, %v1625_v3 }
 0x1d5   : > { %5509 = vmatprep.subr.mxu1 %v6589_v0 }
 0x1d6   : > { %5510 = vmatpush3.msra.mxu1 %v6589_v0 }
 0x1d7   : > { %5514 = vmatprep.subr.msk.mxu1 %vm1703_vm3, %v6606_v60  ;;  %5512 = vmatmul.mubr.msk.f32.vlgmr.msra.gmra.mxu1 %vm1696_vm10, %v7231_v47 }
 0x1d8   : > { %5515 = vmatpush3.msk.msra.mxu1 %vm1703_vm3, %v6606_v60  ;;  %5518 = vmatprep.mubr.msk.f32.mxu1 %vm1696_vm10, %v7232_v44 }
 0x1d9   : > { %5516 = vmatprep.subr.mxu1 %v6619_v19 }
 0x1da   : > { %5517 = vmatpush3.msra.mxu1 %v6619_v19 }
 0x1db   : > { %5521 = vmatprep.subr.msk.mxu1 %vm1703_vm3, %v6636_v54  ;;  %5519 = vmatmul.mubr.msk.f32.vlgmr.msra.gmra.mxu1 %vm1696_vm10, %v7233_v29 }
 0x1dc   : > { %5522 = vmatpush3.msk.msra.mxu1 %vm1703_vm3, %v6636_v54  ;;  %5525 = vmatprep.mubr.msk.f32.mxu1 %vm1696_vm10, %v6710_v7 }
 0x1dd   : > { %5523 = vmatprep.subr.mxu1 %v6650_v40 }
 0x1de   : > { %5524 = vmatpush3.msra.mxu1 %v6650_v40 }
 0x1df   : > { %5528 = vmatprep.subr.msk.mxu1 %vm1703_vm3, %v6670_v62  ;;  %5526 = vmatmul.mubr.msk.f32.vlgmr.msra.gmra.mxu1 %vm1696_vm10, %v6730_v49 }
 0x1e0   : > { %5529 = vmatpush3.msk.msra.mxu1 %vm1703_vm3, %v6670_v62  ;;  %5532 = vmatprep.mubr.msk.f32.mxu1 %vm1696_vm10, %v1633_v61 }
 0x1e1   : > { %5530 = vmatprep.subr.mxu1 %v6688_v25 }
 0x1e2   : > { %5531 = vmatpush3.msra.mxu1 %v6688_v25 }
 0x1e3   : > { %5535 = vmatprep.subr.msk.mxu1 %vm1703_vm3, %v6704_v37  ;;  %5533 = vmatmul.mubr.msk.f32.vlgmr.msra.gmra.mxu1 %vm1696_vm10, %v6538_v46 }
 0x1e4   : > { %5536 = vmatpush3.msk.msra.mxu1 %vm1703_vm3, %v6704_v37  ;;  %5539 = vmatprep.mubr.msk.f32.mxu1 %vm1696_vm10, %v6556_v52 }
 0x1e5   : > { %5537 = vmatprep.subr.mxu1 %v6716_v42 }
 0x1e6   : > { %5538 = vmatpush3.msra.mxu1 %v6716_v42 }
 0x1e7   : > { %5542 = vmatprep.subr.msk.mxu1 %vm1703_vm3, %v7227_v15  ;;  %5540 = vmatmul.mubr.msk.f32.vlgmr.msra.gmra.mxu1 %vm1696_vm10, %v6592_v57 }
 0x1e8   : > { %5543 = vmatpush3.msk.msra.mxu1 %vm1703_vm3, %v7227_v15  ;;  %5546 = vmatprep.mubr.msk.f32.mxu1 %vm1696_vm10, %v7234_v2  ;;  %v1637_v15 = vmax.f32 %v6299_v23, 0.0  ;;  %v1639_v23 = vmax.f32 %v6296_v48, 0.0  ;;  %v7238_v48 = vsel %vm6396_vm9, %v6536_v58, 0.0 }
 0x1e9   : > { %5544 = vmatprep.subr.mxu1 %v7228_v63 }
 0x1ea   : > { %5545 = vmatpush3.msra.mxu1 %v7228_v63 }
 0x1eb   : > { %5549 = vmatprep.subr.msk.mxu1 %vm1703_vm3, %v7199_v9  ;;  %5547 = vmatmul.mubr.msk.f32.vlgmr.msra.gmra.mxu1 %vm1696_vm10, %v7235_v13 }
 0x1ec   : > { %5550 = vmatpush3.msk.msra.mxu1 %vm1703_vm3, %v7199_v9  ;;  %5553 = vmatprep.mubr.msk.f32.mxu1 %vm1696_vm10, %v6659_v32 }
 0x1ed   : > { %5551 = vmatprep.subr.mxu1 %v6426_v5 }
 0x1ee   : > { %5552 = vmatpush3.msra.mxu1 %v6426_v5 }
 0x1ef   : > { %5556 = vmatprep.subr.msk.mxu1 %vm1703_vm3, %v6443_v45  ;;  %5554 = vmatmul.mubr.msk.f32.vlgmr.msra.gmra.mxu1 %vm1696_vm10, %v6683_v22 }
 0x1f0   : > { %5557 = vmatpush3.msk.msra.mxu1 %vm1703_vm3, %v6443_v45  ;;  %5560 = vmatprep.mubr.msk.f32.mxu1 %vm1696_vm10, %v6710_v7 }
 0x1f1   : > { %5558 = vmatprep.subr.mxu1 %v6507_v50 }
 0x1f2   : > { %5559 = vmatpush3.msra.mxu1 %v6507_v50 }
 0x1f3   : > { %5563 = vmatprep.subr.msk.mxu1 %vm1703_vm3, %v6529_v56  ;;  %5561 = vmatmul.mubr.msk.f32.vlgmr.msra.gmra.mxu1 %vm1696_vm10, %v6730_v49 }
 0x1f4   : > { %5564 = vmatpush3.msk.msra.mxu1 %vm1703_vm3, %v6529_v56  ;;  %5567 = vmatprep.mubr.msk.f32.mxu1 %vm1696_vm10, %v7236_v55 }
 0x1f5   : > { %5565 = vmatprep.subr.mxu1 %v6554_v51 }
 0x1f6   : > { %5566 = vmatpush3.msra.mxu1 %v6554_v51 }
 0x1f7   : > { %5570 = vmatprep.subr.msk.mxu1 %vm1703_vm3, %v6573_v35  ;;  %5568 = vmatmul.mubr.msk.f32.vlgmr.msra.gmra.mxu1 %vm1696_vm10, %v7237_v28 }
 0x1f8   : > { %5571 = vmatpush3.msk.msra.mxu1 %vm1703_vm3, %v6573_v35  ;;  %5574 = vmatprep.mubr.msk.f32.mxu1 %vm1696_vm10, %v1637_v15 }
 0x1f9   : > { %5572 = vmatprep.subr.mxu1 %v6589_v0 }
 0x1fa   : > { %5573 = vmatpush3.msra.mxu1 %v6589_v0 }
 0x1fb   : > { %5577 = vmatprep.subr.msk.mxu1 %vm1703_vm3, %v6606_v60  ;;  %5575 = vmatmul.mubr.msk.f32.vlgmr.msra.gmra.mxu1 %vm1696_vm10, %v1638_v20 }
 0x1fc   : > { %5578 = vmatpush3.msk.msra.mxu1 %vm1703_vm3, %v6606_v60  ;;  %5581 = vmatprep.mubr.msk.f32.mxu1 %vm1696_vm10, %v1639_v23 }
 0x1fd   : > { %5579 = vmatprep.subr.mxu1 %v6619_v19 }
 0x1fe   : > { %5580 = vmatpush3.msra.mxu1 %v6619_v19 }
 0x1ff   : > { %5584 = vmatprep.subr.msk.mxu1 %vm1703_vm3, %v6636_v54  ;;  %5582 = vmatmul.mubr.msk.f32.vlgmr.msra.gmra.mxu1 %vm1696_vm10, %v1640_v33 }
 0x200   : > { %5585 = vmatpush3.msk.msra.mxu1 %vm1703_vm3, %v6636_v54  ;;  %5588 = vmatprep.mubr.msk.f32.mxu1 %vm1696_vm10, %v7238_v48 }
 0x201   : > { %5586 = vmatprep.subr.mxu1 %v6650_v40 }
 0x202   : > { %5587 = vmatpush3.msra.mxu1 %v6650_v40 }
 0x203   : > { %5591 = vmatprep.subr.msk.mxu1 %vm1703_vm3, %v6670_v62  ;;  %5589 = vmatmul.mubr.msk.f32.vlgmr.msra.gmra.mxu1 %vm1696_vm10, %v7239_v43 }
 0x204   : > { %5592 = vmatpush3.msk.msra.mxu1 %vm1703_vm3, %v6670_v62  ;;  %5595 = vmatprep.mubr.msk.f32.mxu1 %vm1696_vm10, %v7240_v4 }
 0x205   : > { %5593 = vmatprep.subr.mxu1 %v6688_v25 }
 0x206   : > { %5594 = vmatpush3.msra.mxu1 %v6688_v25 }
 0x207   : > { %5598 = vmatprep.subr.msk.mxu1 %vm1703_vm3, %v6704_v37  ;;  %5596 = vmatmul.mubr.msk.f32.vlgmr.msra.gmra.mxu1 %vm1696_vm10, %v7241_v6 }
 0x208   : > { %5599 = vmatpush3.msk.msra.mxu1 %vm1703_vm3, %v6704_v37  ;;  %5602 = vmatprep.mubr.msk.f32.mxu1 %vm1696_vm10, %v6449_v10 }
 0x209   : > { %5600 = vmatprep.subr.mxu1 %v6716_v42 }
 0x20a   : > { %5601 = vmatpush3.msra.mxu1 %v6716_v42 }
 0x20b   : > { %5605 = vmatprep.subr.msk.mxu1 %vm1703_vm3, %v5751_v27  ;;  %5603 = vmatmul.mubr.msk.f32.vlgmr.msra.gmra.mxu1 %vm1696_vm10, %v6481_v16 }
 0x20c   : > { %5606 = vmatpush3.msk.msra.mxu1 %vm1703_vm3, %v5751_v27  ;;  %5609 = vmatprep.mubr.msk.f32.mxu1 %vm1696_vm10, %v1633_v61 }
 0x20d   : > { %5607 = vmatprep.subr.mxu1 %v5752_v36 }
 0x20e   : > { %5608 = vmatpush3.msra.mxu1 %v5752_v36 }
 0x20f   : > { %5612 = vmatprep.subr.msk.mxu1 %vm1703_vm3, %v7199_v9  ;;  %5610 = vmatmul.mubr.msk.f32.vlgmr.msra.gmra.mxu1 %vm1696_vm10, %v6538_v46 }
 0x210   : > { %5613 = vmatpush3.msk.msra.mxu1 %vm1703_vm3, %v7199_v9  ;;  %5616 = vmatprep.mubr.msk.f32.mxu1 %vm1696_vm10, %v6710_v7 }
 0x211   : > { %5614 = vmatprep.subr.mxu1 %v6426_v5 }
 0x212   : > { %5615 = vmatpush3.msra.mxu1 %v6426_v5  ;;  %v7244_v5 = vld [vmem:[#allocation36_spill] sm:$0xff] }
 0x213   : > { %5619 = vmatprep.subr.msk.mxu1 %vm1703_vm3, %v6443_v45  ;;  %5617 = vmatmul.mubr.msk.f32.vlgmr.msra.gmra.mxu1 %vm1696_vm10, %v6730_v49 }
 0x214   : > { %5620 = vmatpush3.msk.msra.mxu1 %vm1703_vm3, %v6443_v45  ;;  %5623 = vmatprep.mubr.msk.f32.mxu1 %vm1696_vm10, %v6556_v52 }
 0x215   : > { %5621 = vmatprep.subr.mxu1 %v6507_v50 }
 0x216   : > { %5622 = vmatpush3.msra.mxu1 %v6507_v50 }
 0x217   : > { %5626 = vmatprep.subr.msk.mxu1 %vm1703_vm3, %v6529_v56  ;;  %5624 = vmatmul.mubr.msk.f32.vlgmr.msra.gmra.mxu1 %vm1696_vm10, %v6592_v57 }
 0x218   : > { %5627 = vmatpush3.msk.msra.mxu1 %vm1703_vm3, %v6529_v56  ;;  %5630 = vmatprep.mubr.msk.f32.mxu1 %vm1696_vm10, %v1639_v23 }
 0x219   : > { %5628 = vmatprep.subr.mxu1 %v6554_v51 }
 0x21a   : > { %5629 = vmatpush3.msra.mxu1 %v6554_v51 }
 0x21b   : > { %5633 = vmatprep.subr.msk.mxu1 %vm1703_vm3, %v6573_v35  ;;  %5631 = vmatmul.mubr.msk.f32.vlgmr.msra.gmra.mxu1 %vm1696_vm10, %v1640_v33 }
 0x21c   : > { %5634 = vmatpush3.msk.msra.mxu1 %vm1703_vm3, %v6573_v35  ;;  %5637 = vmatprep.mubr.msk.f32.mxu1 %vm1696_vm10, %v1641_v18 }
 0x21d   : > { %5635 = vmatprep.subr.mxu1 %v6589_v0 }
 0x21e   : > { %5636 = vmatpush3.msra.mxu1 %v6589_v0 }
 0x21f   : > { %5640 = vmatprep.subr.msk.mxu1 %vm1703_vm3, %v6606_v60  ;;  %5638 = vmatmul.mubr.msk.f32.vlgmr.msra.gmra.mxu1 %vm1696_vm10, %v7242_v17 }
 0x220   : > { %5641 = vmatpush3.msk.msra.mxu1 %vm1703_vm3, %v6606_v60  ;;  %5644 = vmatprep.mubr.msk.f32.mxu1 %vm1696_vm10, %v7243_v41 }
 0x221   : > { %5642 = vmatprep.subr.mxu1 %v6619_v19 }
 0x222   : > { %5643 = vmatpush3.msra.mxu1 %v6619_v19 }
 0x223   : > { %5647 = vmatprep.subr.msk.mxu1 %vm1703_vm3, %v6636_v54  ;;  %5645 = vmatmul.mubr.msk.f32.vlgmr.msra.gmra.mxu1 %vm1696_vm10, %v7244_v5 }
 0x224   : > { %5648 = vmatpush3.msk.msra.mxu1 %vm1703_vm3, %v6636_v54  ;;  %5651 = vmatprep.mubr.msk.f32.mxu1 %vm1696_vm10, %v6449_v10 }
 0x225   : > { %5649 = vmatprep.subr.mxu1 %v6650_v40 }
 0x226   : > { %5650 = vmatpush3.msra.mxu1 %v6650_v40 }
 0x227   : > { %5654 = vmatprep.subr.msk.mxu1 %vm1703_vm3, %v6670_v62  ;;  %5652 = vmatmul.mubr.msk.f32.vlgmr.msra.gmra.mxu1 %vm1696_vm10, %v6481_v16 }
 0x228   : > { %5655 = vmatpush3.msk.msra.mxu1 %vm1703_vm3, %v6670_v62  ;;  %5658 = vmatprep.mubr.msk.f32.mxu1 %vm1696_vm10, %v7245_v21 }
 0x229   : > { %5656 = vmatprep.subr.mxu1 %v6688_v25 }
 0x22a   : > { %5657 = vmatpush3.msra.mxu1 %v6688_v25 }
 0x22b   : > { %5661 = vmatprep.subr.msk.mxu1 %vm1703_vm3, %v6704_v37  ;;  %5659 = vmatmul.mubr.msk.f32.vlgmr.msra.gmra.mxu1 %vm1696_vm10, %v7246_v39 }
 0x22c   : > { %5662 = vmatpush3.msk.msra.mxu1 %vm1703_vm3, %v6704_v37  ;;  %5665 = vmatprep.mubr.msk.f32.mxu1 %vm1696_vm10, %v6451_v31 }
 0x22d   : > { %5663 = vmatprep.subr.mxu1 %v6716_v42 }
 0x22e   : > { %5664 = vmatpush3.msra.mxu1 %v6716_v42 }
 0x22f   : > { %5666 = vmatmul.mubr.msk.f32.vlgmr.msra.gmra.mxu1 %vm1696_vm10, %v6429_v53 }
 0x25c   : > { %v5422_v9 = vpop.f32.mrf.mxu1 }
 0x25e   : > { %v1773_v45 = vpop.f32.mrf.mxu1 }
 0x267   : > { %v5429_v10 = vpop.f32.mrf.mxu1 }
 0x268   : > { %v1863_v16 = vadd.f32 %v5429_v10, %v5422_v9 }
 0x269   : > { %v1857_v26 = vpop.f32.mrf.mxu1 }
 0x26a   : > { %v1858_v50 = vadd.f32 %v1857_v26, %v1773_v45 }
 0x26b   : > { %v5436_v25 = vpop.f32.mrf.mxu1 }
 0x26c   : > { %v1964_v56 = vadd.f32 %v5436_v25, %v1863_v16 }
 0x26d   : > { %v1954_v58 = vpop.f32.mrf.mxu1 }
 0x26e   : > { %v1963_v46 = vadd.f32 %v1954_v58, %v1858_v50 }
 0x26f   : > { %v5443_v51 = vpop.f32.mrf.mxu1 }
 0x270   : > { %v2070_v52 = vadd.f32 %v5443_v51, %v1964_v56 }
 0x271   : > { %v2060_v31 = vpop.f32.mrf.mxu1 }
 0x272   : > { %v2069_v35 = vadd.f32 %v2060_v31, %v1963_v46 }
 0x273   : > { %v5450_v0 = vpop.f32.mrf.mxu1 }
 0x274   : > { %v2159_v57 = vadd.f32 %v5450_v0, %v2070_v52 }
 0x275   : > { %v2149_v60 = vpop.f32.mrf.mxu1 }
 0x276   : > { %v2158_v19 = vadd.f32 %v2149_v60, %v2069_v35 }
 0x277   : > { %v5457_v30 = vpop.f32.mrf.mxu1 }
 0x278   : > { %v2248_v53 = vadd.f32 %v5457_v30, %v2159_v57 }
 0x279   : > { %v2238_v54 = vpop.f32.mrf.mxu1 }
 0x27a   : > { %v2247_v40 = vadd.f32 %v2238_v54, %v2158_v19 }
 0x27b   : > { %v5464_v32 = vpop.f32.mrf.mxu1 }
 0x27c   : > { %v2351_v7 = vadd.f32 %v5464_v32, %v2248_v53 }
 0x27d   : > { %v2341_v62 = vpop.f32.mrf.mxu1 }
 0x27e   : > { %v2350_v24 = vadd.f32 %v2341_v62, %v2247_v40 }
 0x27f   : > { %v5471_v42 = vpop.f32.mrf.mxu1 }
 0x280   : > { %v2440_v22 = vadd.f32 %v5471_v42, %v2351_v7 }
 0x281   : > { %v2430_v37 = vpop.f32.mrf.mxu1 }
 0x282   : > { %v2439_v49 = vadd.f32 %v2430_v37, %v2350_v24 }
 0x283   : > { %v5478_v63 = vpop.f32.mrf.mxu1 }
 0x284   : > { %v7040_v11 = vadd.f32 %v5478_v63, %v2440_v22 }
 0x285   : > { %v2519_v1 = vpop.f32.mrf.mxu1 }
 0x286   : > { %v7042_v38 = vadd.f32 %v2519_v1, %v2439_v49 }
 0x287   : > { %v5485_v12 = vpop.f32.mrf.mxu1 }
 0x289   : > { %v2611_v59 = vpop.f32.mrf.mxu1 }
 0x28b   : > { %v5492_v14 = vpop.f32.mrf.mxu1 }
 0x28c   : > { %v2692_v34 = vadd.f32 %v5492_v14, %v5485_v12 }
 0x28d   : > { %v2686_v3 = vpop.f32.mrf.mxu1 }
 0x28e   : > { %v2687_v8 = vadd.f32 %v2686_v3, %v2611_v59 }
 0x28f   : > { %v5499_v47 = vpop.f32.mrf.mxu1 }
 0x290   : > { %v2785_v44 = vadd.f32 %v5499_v47, %v2692_v34 }
 0x291   : > { %v2775_v29 = vpop.f32.mrf.mxu1 }
 0x292   : > { %v2784_v61 = vadd.f32 %v2775_v29, %v2687_v8 }
 0x293   : > { %v5506_v2 = vpop.f32.mrf.mxu1 }
 0x294   : > { %v2862_v13 = vadd.f32 %v5506_v2, %v2785_v44 }
 0x295   : > { %v2852_v55 = vpop.f32.mrf.mxu1 }
 0x296   : > { %v2861_v15 = vadd.f32 %v2852_v55, %v2784_v61 }
 0x297   : > { %v5513_v28 = vpop.f32.mrf.mxu1 }
 0x298   : > { %v2944_v20 = vadd.f32 %v5513_v28, %v2862_v13 }
 0x299   : > { %v2934_v23 = vpop.f32.mrf.mxu1 }
 0x29a   : > { %v2943_v33 = vadd.f32 %v2934_v23, %v2861_v15 }
 0x29b   : > { %v5520_v48 = vpop.f32.mrf.mxu1 }
 0x29c   : > { %v3025_v43 = vadd.f32 %v5520_v48, %v2944_v20 }
 0x29d   : > { %v3015_v4 = vpop.f32.mrf.mxu1 }
 0x29e   : > { %v3024_v6 = vadd.f32 %v3015_v4, %v2943_v33 }
 0x29f   : > { %v5527_v27 = vpop.f32.mrf.mxu1 }
 0x2a0   : > { %v3102_v36 = vadd.f32 %v5527_v27, %v3025_v43 }
 0x2a1   : > { %v3092_v18 = vpop.f32.mrf.mxu1 }
 0x2a2   : > { %v3101_v17 = vadd.f32 %v3092_v18, %v3024_v6 }
 0x2a3   : > { %v5534_v41 = vpop.f32.mrf.mxu1 }
 0x2a4   : > { %v3184_v5 = vadd.f32 %v5534_v41, %v3102_v36 }
 0x2a5   : > { %v3174_v21 = vpop.f32.mrf.mxu1 }
 0x2a6   : > { %v3183_v39 = vadd.f32 %v3174_v21, %v3101_v17 }
 0x2a7   : > { %v5541_v9 = vpop.f32.mrf.mxu1 }
 0x2a8   : > { %v7044_v45 = vadd.f32 %v5541_v9, %v3184_v5 }
 0x2a9   : > { %v3255_v10 = vpop.f32.mrf.mxu1 }
 0x2aa   : > { %v3267_v16 = vmax.f32 %v7040_v11, %v7044_v45  ;;  %v7048_v26 = vadd.f32 %v3255_v10, %v3183_v39  ;;  %v4735_v11 = vld [vmem:[%s7079_s5 + $0x8] sm:$0xff] }
 0x2ab   : > { %v5548_v50 = vpop.f32.mrf.mxu1 }
 0x2ac   : > { %v3266_v25 = vmax.f32 %v7042_v38, %v7048_v26 }
 0x2ad   : > { %v3334_v56 = vpop.f32.mrf.mxu1 }
 0x2af   : > { %v5555_v58 = vpop.f32.mrf.mxu1 }
 0x2b0   : > { %v3415_v12 = vadd.f32 %v5555_v58, %v5548_v50 }
 0x2b1   : > { %v3409_v46 = vpop.f32.mrf.mxu1 }
 0x2b2   : > { %v3410_v14 = vadd.f32 %v3409_v46, %v3334_v56 }
 0x2b3   : > { %v5562_v51 = vpop.f32.mrf.mxu1 }
 0x2b4   : > { %v3494_v34 = vadd.f32 %v5562_v51, %v3415_v12 }
 0x2b5   : > { %v3484_v52 = vpop.f32.mrf.mxu1 }
 0x2b6   : > { %v3493_v8 = vadd.f32 %v3484_v52, %v3410_v14 }
 0x2b7   : > { %v5569_v31 = vpop.f32.mrf.mxu1 }
 0x2b8   : > { %v3590_v47 = vadd.f32 %v5569_v31, %v3494_v34 }
 0x2b9   : > { %v3580_v35 = vpop.f32.mrf.mxu1 }
 0x2ba   : > { %v3589_v61 = vadd.f32 %v3580_v35, %v3493_v8 }
 0x2bb   : > { %v5576_v0 = vpop.f32.mrf.mxu1 }
 0x2bc   : > { %v3673_v2 = vadd.f32 %v5576_v0, %v3590_v47 }
 0x2bd   : > { %v3663_v57 = vpop.f32.mrf.mxu1 }
 0x2be   : > { %v3672_v28 = vadd.f32 %v3663_v57, %v3589_v61  ;;  %v5070_v57 = vld [vmem:[%s7078_s4] ss:$0 sm:$0xff] }
 0x2bf   : > { %v5583_v60 = vpop.f32.mrf.mxu1 }
 0x2c0   : > { %v3756_v20 = vadd.f32 %v5583_v60, %v3673_v2 }
 0x2c1   : > { %v3746_v19 = vpop.f32.mrf.mxu1 }
 0x2c2   : > { %v3755_v43 = vadd.f32 %v3746_v19, %v3672_v28 }
 0x2c3   : > { %v5590_v30 = vpop.f32.mrf.mxu1 }
 0x2c4   : > { %v3850_v4 = vadd.f32 %v5590_v30, %v3756_v20 }
 0x2c5   : > { %v3840_v53 = vpop.f32.mrf.mxu1 }
 0x2c6   : > { %v3849_v18 = vadd.f32 %v3840_v53, %v3755_v43 }
 0x2c7   : > { %v5597_v54 = vpop.f32.mrf.mxu1 }
 0x2c8   : > { %v3931_v17 = vadd.f32 %v5597_v54, %v3850_v4 }
 0x2c9   : > { %v3921_v40 = vpop.f32.mrf.mxu1 }
 0x2ca   : > { %v3930_v39 = vadd.f32 %v3921_v40, %v3849_v18 }
 0x2cb   : > { %v5604_v32 = vpop.f32.mrf.mxu1 }
 0x2cc   : > { %v4012_v9 = vadd.f32 %v5604_v32, %v3931_v17  ;;  %v4734_v32 = vld [vmem:[%s7079_s5] sm:$0xff] }
 0x2cd   : > { %v4002_v7 = vpop.f32.mrf.mxu1 }
 0x2ce   : > { %v4011_v58 = vadd.f32 %v4002_v7, %v3930_v39  ;;  %v4014_v31 = vmax.f32 %v3267_v16, %v4012_v9 }
 0x2cf   : > { %v5611_v62 = vpop.f32.mrf.mxu1 }
 0x2d0   : > { %v4013_v19 = vmax.f32 %v3266_v25, %v4011_v58 }
 0x2d1   : > { %v4081_v24 = vpop.f32.mrf.mxu1 }
 0x2d3   : > { %v5618_v42 = vpop.f32.mrf.mxu1 }
 0x2d4   : > { %v4162_v44 = vadd.f32 %v5618_v42, %v5611_v62 }
 0x2d5   : > { %v4156_v22 = vpop.f32.mrf.mxu1 }
 0x2d6   : > { %v4157_v13 = vadd.f32 %v4156_v22, %v4081_v24 }
 0x2d7   : > { %v5625_v37 = vpop.f32.mrf.mxu1 }
 0x2d8   : > { %v4241_v55 = vadd.f32 %v5625_v37, %v4162_v44 }
 0x2d9   : > { %v4231_v49 = vpop.f32.mrf.mxu1 }
 0x2da   : > { %v4240_v23 = vadd.f32 %v4231_v49, %v4157_v13 }
 0x2db   : > { %v5632_v63 = vpop.f32.mrf.mxu1 }
 0x2dc   : > { %v4318_v33 = vadd.f32 %v5632_v63, %v4241_v55 }
 0x2dd   : > { %v4308_v1 = vpop.f32.mrf.mxu1 }
 0x2de   : > { %v4317_v6 = vadd.f32 %v4308_v1, %v4240_v23 }
 0x2df   : > { %v5639_v59 = vpop.f32.mrf.mxu1 }
 0x2e0   : > { %v4400_v27 = vadd.f32 %v5639_v59, %v4318_v33  ;;  %v4751_v59 = vld [vmem:[#allocation2] sm:$0x1] }
 0x2e1   : > { %v4390_v3 = vpop.f32.mrf.mxu1 }
 0x2e2   : > { %v4399_v41 = vadd.f32 %v4390_v3, %v4317_v6 }
 0x2e3   : > { %v5646_v29 = vpop.f32.mrf.mxu1 }
 0x2e4   : > { %v4481_v5 = vadd.f32 %v5646_v29, %v4400_v27 }
 0x2e5   : > { %v4471_v15 = vpop.f32.mrf.mxu1 }
 0x2e6   : > { %v4480_v10 = vadd.f32 %v4471_v15, %v4399_v41 }
 0x2e7   : > { %v5653_v48 = vpop.f32.mrf.mxu1 }
 0x2e8   : > { %v4558_v50 = vadd.f32 %v5653_v48, %v4481_v5 }
 0x2e9   : > { %v4548_v36 = vpop.f32.mrf.mxu1 }
 0x2ea   : > { %v4557_v46 = vadd.f32 %v4548_v36, %v4480_v10 }
 0x2eb   : > { %v5660_v21 = vpop.f32.mrf.mxu1 }
 0x2ec   : > { %v4639_v51 = vadd.f32 %v5660_v21, %v4558_v50 }
 0x2ed   : > { %v4629_v56 = vpop.f32.mrf.mxu1 }
 0x2ee   : > { %v4638_v35 = vadd.f32 %v4629_v56, %v4557_v46 }
 0x2ef   : > { %v5667_v52 = vpop.f32.mrf.mxu1 }
 0x2f0   : > { %v4720_v0 = vadd.f32 %v5667_v52, %v4639_v51 }
 0x2f1   : > { %v4710_v60 = vpop.f32.mrf.mxu1 }
 0x2f2   : > { %v4722_v30 = vmax.f32 %v4014_v31, %v4720_v0  ;;  %v4719_v53 = vadd.f32 %v4710_v60, %v4638_v35 }
 0x2f4   : > { %v4731_v54 = vadd.f32 %v5070_v57, %v4722_v30  ;;  %v4721_v40 = vmax.f32 %v4013_v19, %v4719_v53 }
 0x2f6   : > { %v4733_v45 = vmax.f32 %v4731_v54, 0.0  ;;  %v4730_v16 = vadd.f32 %v5070_v57, %v4721_v40 }
 0x2f8   : > { %v4732_v7 = vmax.f32 %v4730_v16, 0.0  ;;  %v4737_v62 = vmul.f32 %v4735_v11, %v4733_v45 }
 0x2fa   : > { %v4736_v24 = vmul.f32 %v4734_v32, %v4732_v7  ;;  %v4740_v26 = vsel %vm4738_vm12, %v4737_v62, 0.0 }
 0x2fc   : > { %v4739_v38 = vsel %vm4738_vm12, %v4736_v24, 0.0 }
 0x2fd   : > { %v4741_v25 = vadd.f32 %v4740_v26, %v4739_v38 }
 0x2ff   : > { %v4742_v42 = vrot.slane %v4741_v25, 4 }
 0x301   : > { %v4743_v22 = vadd.f32 %v4742_v42, %v4741_v25 }
 0x303   : > { %v4744_v37 = vrot.slane %v4743_v22, 2 }
 0x305   : > { %v4745_v49 = vadd.f32 %v4744_v37, %v4743_v22 }
 0x307   : > { %v4746_v63 = vrot.slane %v4745_v49, 1 }
 0x309   : > { %v4747_v1 = vadd.f32 %v4746_v63, %v4745_v49 }
 0x30b   : > { %v4748_v12 = vsel %vm4738_vm12, %v4747_v1, 0.0 }
 0x30c   : > { %4749 = vadd.xlane.f32.xlu0 %v4748_v12 }
 0x395   : > { %v4750_v14 = vpop.xlane.xlu0 %4749 }
 0x396   : > { %v4752_v34 = vadd.f32 %v4751_v59, %v4750_v14 }
 0x398   : > { %v4753_v3 = vsub.f32 0.0, %v4752_v34 }
 0x39a   : > { %v4754_v8 = vmul.f32 1.442695, %v4753_v3 }
 0x39c   : > { %5747 = vpow2.f32 %v4754_v8 }
 0x3a9   : > { %v5748_v47 = vpop.eup %5747 }
 0x3aa   : > { %v4756_v44 = vadd.f32 1.0, %v5748_v47 }
 0x3ac   : > { %5749 = vrcp.f32 %v4756_v44 }
 0x3b9   : > { %v5750_v29 = vpop.eup %5749 }
 0x3ba   : > { %4760 = vst.msk [vmem:[%s276_s18] sm:$0x1] %vm4759_vm13, %v5750_v29 }
 0x3bb PF: > { %s19_s26 = sadd.s32 1, %s5759_s26  }
 0x3bc   : > { %p16_p4 = scmp.ge.s32.totalorder %s19_s26, 4  }
 0x3be   :  { %18 = sbr.rel (!%p16_p4) target bundleno = 3 (0x3), region = 86 }

</bundles_post_ra>
